<compile_context>
chip_gen: v5e
topology: v5e:2x2
jax: 0.10.0
libtpu: 0.0.40
codegen_flags: <defaults>
</compile_context>

<pallas_src>
import jax
import jax.numpy as jnp
from jax.experimental import pallas as pl
from jax.experimental.pallas import tpu as pltpu

NUM_FEATURES = 784
NUM_HIDDEN_1 = 32
LEAKY_SLOPE = 0.01  # torch.nn.functional.leaky_relu default negative_slope


def autoencoder_kernel(x_ref, w1_ref, b1_ref, w2_ref, b2_ref, out_ref):
    # x_ref: (TB, F), w1_ref: (F, H), b1_ref: (1, H), w2_ref: (H, F), b2_ref: (1, F)
    x = x_ref[...]  # consumed as-is (f32 or bf16); MXU accumulates in f32 below

    # encoder: linear_1 + leaky_relu (f32 accumulation)
    h = jnp.dot(x, w1_ref[...], preferred_element_type=jnp.float32) + b1_ref[...]
    h = jnp.where(h > 0, h, LEAKY_SLOPE * h)

    # decoder: linear_2 + sigmoid
    logits = (
        jnp.dot(h.astype(w2_ref.dtype), w2_ref[...], preferred_element_type=jnp.float32)
        + b2_ref[...]
    )
    # exact sigmoid: exp goes to the EUP slot; the exact divide keeps the
    # result bit-comparable to jax.nn.sigmoid (the approx reciprocal was the
    # source of the earlier correctness failure).
    decoded = 1.0 / (1.0 + jnp.exp(-logits))

    out_ref[...] = decoded.astype(out_ref.dtype)


def autoencoder_forward(x, w1, b1, w2, b2, *, batch_tile=512):
    """x: (B, F). w1: (F, H), b1: (H,), w2: (H, F), b2: (F,)."""
    B, F = x.shape
    H = w1.shape[1]

    if B <= batch_tile:
        # Block == full array dim: no (8,128) divisibility requirement.
        tile, B_pad, x_in = B, B, x
    else:
        tile = batch_tile
        B_pad = pl.cdiv(B, tile) * tile
        x_in = jnp.pad(x, ((0, B_pad - B), (0, 0))) if B_pad != B else x

    b1_2d = b1.reshape(1, H)
    b2_2d = b2.reshape(1, F)

    grid = (B_pad // tile,)

    act_bytes = jnp.dtype(x.dtype).itemsize
    w_bytes = jnp.dtype(w1.dtype).itemsize
    cost = pl.CostEstimate(
        flops=2 * B_pad * F * H * 2,               # two matmuls
        transcendentals=B_pad * F,                 # exp in the sigmoid
        bytes_accessed=(2 * B_pad * F * act_bytes  # x in + out
                        + 2 * F * H * w_bytes      # w1 + w2
                        + (H + F) * w_bytes),      # biases
    )

    out = pl.pallas_call(
        autoencoder_kernel,
        out_shape=jax.ShapeDtypeStruct((B_pad, F), x.dtype),
        grid_spec=pltpu.PrefetchScalarGridSpec(
            num_scalar_prefetch=0,
            grid=grid,
            in_specs=[
                pl.BlockSpec((tile, F), lambda i: (i, 0)),  # x tile over batch
                pl.BlockSpec((F, H), lambda i: (0, 0)),     # w1 (VMEM-resident)
                pl.BlockSpec((1, H), lambda i: (0, 0)),     # b1
                pl.BlockSpec((H, F), lambda i: (0, 0)),     # w2 (VMEM-resident)
                pl.BlockSpec((1, F), lambda i: (0, 0)),     # b2
            ],
            out_specs=pl.BlockSpec((tile, F), lambda i: (i, 0)),
        ),
        compiler_params=pltpu.CompilerParams(
            dimension_semantics=("parallel",),   # shard batch steps across v7x TCs
            vmem_limit_bytes=48 * 1024 * 1024,   # > v5e/v6e scoped defaults, < v7x physical
        ),
        cost_estimate=cost,
    )(x_in, w1, b1_2d, w2, b2_2d)

    return out[:B] if B_pad != B else out


def init_params(key, dtype=jnp.float32):
    """Deterministic synthetic init matching the PyTorch module's shapes.

    linear_1.weight ~ N(0, 0.1), linear_1.bias = 0 (as in __init__).
    linear_2 gets a deterministic normal init too (synthetic, no checkpoint).
    Returned weights are pre-transposed to (in, out) layout.
    """
    k1, k2, k3 = jax.random.split(key, 3)
    w1 = (0.1 * jax.random.normal(k1, (NUM_FEATURES, NUM_HIDDEN_1))).astype(dtype)
    b1 = jnp.zeros((NUM_HIDDEN_1,), dtype=dtype)
    w2 = (0.1 * jax.random.normal(k2, (NUM_HIDDEN_1, NUM_FEATURES))).astype(dtype)
    b2 = (0.01 * jax.random.normal(k3, (NUM_FEATURES,))).astype(dtype)
    return w1, b1, w2, b2


def reference_forward(x, w1, b1, w2, b2):
    h = x @ w1 + b1
    h = jnp.where(h > 0, h, LEAKY_SLOPE * h)
    logits = h @ w2 + b2
    return jax.nn.sigmoid(logits)


if __name__ == "__main__":
    key = jax.random.PRNGKey(0)
    kp, kx = jax.random.split(key)

    w1, b1, w2, b2 = init_params(kp)

    batch = 64
    x = jax.random.normal(kx, (batch, NUM_FEATURES), dtype=jnp.float32)

    # f32 path (tile clamps to the small batch; grid = 1).
    out = autoencoder_forward(x, w1, b1, w2, b2)
    out = jax.block_until_ready(out)

    ref = reference_forward(x, w1, b1, w2, b2)
    assert out.shape == (batch, NUM_FEATURES)
    assert jnp.allclose(out, ref, atol=2e-3), "mismatch vs JAX reference (f32)"

    # bf16 activation/weight I/O smoke test (halves HBM traffic on a mem-bound
    # kernel). Loose tolerance: bf16 output quantization alone is ~4e-3.
    x_bf = x.astype(jnp.bfloat16)
    w1b, b1b, w2b, b2b = (a.astype(jnp.bfloat16) for a in (w1, b1, w2, b2))
    out_bf = jax.block_until_ready(autoencoder_forward(x_bf, w1b, b1b, w2b, b2b))
    assert out_bf.shape == (batch, NUM_FEATURES) and out_bf.dtype == jnp.bfloat16
    assert jnp.allclose(out_bf.astype(jnp.float32), ref, atol=1e-1), "mismatch (bf16)"

    print("KERNEL_OK")
</pallas_src>

<mosaic_0001>
module attributes {stable_mosaic.version = 11 : i64} {
  func.func @autoencoder_kernel(%arg0: i32, %arg1: memref<64x784xf32, #tpu.memory_space<vmem>>, %arg2: memref<784x32xf32, #tpu.memory_space<vmem>>, %arg3: memref<1x32xf32, #tpu.memory_space<vmem>>, %arg4: memref<32x784xf32, #tpu.memory_space<vmem>>, %arg5: memref<1x784xf32, #tpu.memory_space<vmem>>, %arg6: memref<64x784xf32, #tpu.memory_space<vmem>>) attributes {dimension_semantics = [#tpu.dimension_semantics<parallel>], iteration_bounds = array<i64: 1>, scalar_prefetch = 0 : i64, scratch_operands = 0 : i64, tpu.core_type = #tpu.core_type<tc>, window_params = [{transform_indices = @transform_0, window_bounds = array<i64: 64, 784>}, {pipeline_mode = #tpu.pipeline_mode<synchronous>, transform_indices = @transform_1, window_bounds = array<i64: 784, 32>}, {pipeline_mode = #tpu.pipeline_mode<synchronous>, transform_indices = @transform_2, window_bounds = array<i64: 1, 32>}, {pipeline_mode = #tpu.pipeline_mode<synchronous>, transform_indices = @transform_3, window_bounds = array<i64: 32, 784>}, {pipeline_mode = #tpu.pipeline_mode<synchronous>, transform_indices = @transform_4, window_bounds = array<i64: 1, 784>}, {transform_indices = @transform_5, window_bounds = array<i64: 64, 784>}]} {
    %c0 = arith.constant 0 : index
    %c0_0 = arith.constant 0 : index
    %0 = vector.load %arg1[%c0, %c0_0] : memref<64x784xf32, #tpu.memory_space<vmem>>, vector<64x784xf32>
    %c0_1 = arith.constant 0 : index
    %c0_2 = arith.constant 0 : index
    %1 = vector.load %arg2[%c0_1, %c0_2] : memref<784x32xf32, #tpu.memory_space<vmem>>, vector<784x32xf32>
    %cst = arith.constant dense<0.000000e+00> : vector<64x32xf32>
    %2 = tpu.matmul %0, %1, %cst {dimension_numbers = #tpu.dot_dimension_numbers<[1], [0], [0], [1], [0, 0, 1, 1], [], []>} : vector<64x784xf32>, vector<784x32xf32>, vector<64x32xf32> -> vector<64x32xf32>
    %c0_3 = arith.constant 0 : index
    %c0_4 = arith.constant 0 : index
    %3 = vector.load %arg3[%c0_3, %c0_4] : memref<1x32xf32, #tpu.memory_space<vmem>>, vector<1x32xf32>
    %4 = vector.broadcast %3 : vector<1x32xf32> to vector<64x32xf32>
    %5 = arith.addf %2, %4 : vector<64x32xf32>
    %cst_5 = arith.constant 0.000000e+00 : f32
    %6 = vector.broadcast %cst_5 : f32 to vector<64x32xf32>
    %7 = arith.cmpf ogt, %5, %6 : vector<64x32xf32>
    %cst_6 = arith.constant 0.00999999977 : f32
    %8 = vector.broadcast %cst_6 : f32 to vector<64x32xf32>
    %9 = arith.mulf %8, %5 : vector<64x32xf32>
    %10 = arith.select %7, %5, %9 : vector<64x32xi1>, vector<64x32xf32>
    %c0_7 = arith.constant 0 : index
    %c0_8 = arith.constant 0 : index
    %11 = vector.load %arg4[%c0_7, %c0_8] : memref<32x784xf32, #tpu.memory_space<vmem>>, vector<32x784xf32>
    %cst_9 = arith.constant dense<0.000000e+00> : vector<64x784xf32>
    %12 = tpu.matmul %10, %11, %cst_9 {dimension_numbers = #tpu.dot_dimension_numbers<[1], [0], [0], [1], [0, 0, 1, 1], [], []>} : vector<64x32xf32>, vector<32x784xf32>, vector<64x784xf32> -> vector<64x784xf32>
    %c0_10 = arith.constant 0 : index
    %c0_11 = arith.constant 0 : index
    %13 = vector.load %arg5[%c0_10, %c0_11] : memref<1x784xf32, #tpu.memory_space<vmem>>, vector<1x784xf32>
    %14 = vector.broadcast %13 : vector<1x784xf32> to vector<64x784xf32>
    %15 = arith.addf %12, %14 : vector<64x784xf32>
    %cst_12 = arith.constant 0.000000e+00 : f32
    %16 = vector.broadcast %cst_12 : f32 to vector<64x784xf32>
    %17 = arith.subf %16, %15 : vector<64x784xf32>
    %18 = math.exp %17 : vector<64x784xf32>
    %cst_13 = arith.constant 1.000000e+00 : f32
    %19 = vector.broadcast %cst_13 : f32 to vector<64x784xf32>
    %20 = arith.addf %19, %18 : vector<64x784xf32>
    %cst_14 = arith.constant 1.000000e+00 : f32
    %21 = vector.broadcast %cst_14 : f32 to vector<64x784xf32>
    %22 = arith.divf %21, %20 : vector<64x784xf32>
    %c0_15 = arith.constant 0 : index
    %c0_16 = arith.constant 0 : index
    %23 = vector.load %arg6[%c0_15, %c0_16] : memref<64x784xf32, #tpu.memory_space<vmem>>, vector<64x784xf32>
    tpu.vector_store %arg6[%c0_15, %c0_16], %22 {strides = array<i32>} : memref<64x784xf32, #tpu.memory_space<vmem>>, vector<64x784xf32>,
    return
  }
  func.func @transform_0(%arg0: i32) -> (i32, i32) {
    %c0_i32 = arith.constant 0 : i32
    %c0_i32_0 = arith.constant 0 : i32
    return %arg0, %c0_i32 : i32, i32
  }
  func.func @transform_1(%arg0: i32) -> (i32, i32) {
    %c0_i32 = arith.constant 0 : i32
    %c0_i32_0 = arith.constant 0 : i32
    %c0_i32_1 = arith.constant 0 : i32
    return %c0_i32, %c0_i32_0 : i32, i32
  }
  func.func @transform_2(%arg0: i32) -> (i32, i32) {
    %c0_i32 = arith.constant 0 : i32
    %c0_i32_0 = arith.constant 0 : i32
    %c0_i32_1 = arith.constant 0 : i32
    return %c0_i32, %c0_i32_0 : i32, i32
  }
  func.func @transform_3(%arg0: i32) -> (i32, i32) {
    %c0_i32 = arith.constant 0 : i32
    %c0_i32_0 = arith.constant 0 : i32
    %c0_i32_1 = arith.constant 0 : i32
    return %c0_i32, %c0_i32_0 : i32, i32
  }
  func.func @transform_4(%arg0: i32) -> (i32, i32) {
    %c0_i32 = arith.constant 0 : i32
    %c0_i32_0 = arith.constant 0 : i32
    %c0_i32_1 = arith.constant 0 : i32
    return %c0_i32, %c0_i32_0 : i32, i32
  }
  func.func @transform_5(%arg0: i32) -> (i32, i32) {
    %c0_i32 = arith.constant 0 : i32
    %c0_i32_0 = arith.constant 0 : i32
    return %arg0, %c0_i32 : i32, i32
  }
}

</mosaic_0001>

<bundles_post_ra>
// kernel: tpu_custom_call.1
= control target key start
LH: loop header
LB: loop body
LE: loop exit
PB: predicated region body
PF: predicated region fallthrough
CT: control target
= control target key end

     0   :  { %s4018_s0 = inlined_call_operand.vmem [shape: f32[64,784], index: 0, kind: input, shape index: {}]   ;;  %s4019_s1 = inlined_call_operand.vmem [shape: f32[784,32], index: 1, kind: input, shape index: {}]   ;;  %s4020_s2 = inlined_call_operand.vmem [shape: f32[1,32], index: 2, kind: input, shape index: {}]   ;;  %s4021_s3 = inlined_call_operand.vmem [shape: f32[32,784], index: 3, kind: input, shape index: {}]   ;;  %s4022_s4 = inlined_call_operand.vmem [shape: f32[1,784], index: 4, kind: input, shape index: {}]   ;;  %s4023_s5 = inlined_call_operand.hbm [shape: f32[64,784], index: 5, kind: output, shape index: {}]  }
   0x1   :  { %v92_v0 = vld [vmem:[%s4019_s1 + $0x78] sm:$0xff]  ;;  %v91_v1 = vld [vmem:[%s4019_s1 + $0x70] sm:$0xff]  ;;  %v90_v4 = vld [vmem:[%s4019_s1 + $0x68] sm:$0xff] }
   0x2   :  { %v108_v2 = vld [vmem:[%s4019_s1 + $0xf8] sm:$0xff]  ;;  %2073 = vmatpush.msra.mxu2 %v92_v0  ;;  %v107_v3 = vld [vmem:[%s4019_s1 + $0xf0] sm:$0xff]  ;;  %v106_v5 = vld [vmem:[%s4019_s1 + $0xe8] sm:$0xff]  ;;  %204 = vmatpush.msra.mxu0 %v92_v0 }
   0x3   :  { %2089 = vmatpush.msra.mxu3 %v108_v2  ;;  %245 = vmatpush.msra.mxu1 %v108_v2  ;;  %v89_v6 = vld [vmem:[%s4019_s1 + $0x60] sm:$0xff]  ;;  %v88_v8 = vld [vmem:[%s4019_s1 + $0x58] sm:$0xff]  ;;  %v87_v10 = vld [vmem:[%s4019_s1 + $0x50] sm:$0xff] }
   0x4   :  { %2074 = vmatpush.msra.mxu2 %v91_v1  ;;  %v105_v7 = vld [vmem:[%s4019_s1 + $0xe0] sm:$0xff]  ;;  %205 = vmatpush.msra.mxu0 %v91_v1  ;;  %v104_v9 = vld [vmem:[%s4019_s1 + $0xd8] sm:$0xff]  ;;  %v103_v11 = vld [vmem:[%s4019_s1 + $0xd0] sm:$0xff] }
   0x5   :  { %2090 = vmatpush.msra.mxu3 %v107_v3  ;;  %246 = vmatpush.msra.mxu1 %v107_v3  ;;  %v86_v12 = vld [vmem:[%s4019_s1 + $0x48] sm:$0xff]  ;;  %v85_v14 = vld [vmem:[%s4019_s1 + $0x40] sm:$0xff]  ;;  %v84_v16 = vld [vmem:[%s4019_s1 + $0x38] sm:$0xff] }
   0x6   :  { %2075 = vmatpush.msra.mxu2 %v90_v4  ;;  %206 = vmatpush.msra.mxu0 %v90_v4  ;;  %v102_v13 = vld [vmem:[%s4019_s1 + $0xc8] sm:$0xff]  ;;  %v101_v15 = vld [vmem:[%s4019_s1 + $0xc0] sm:$0xff]  ;;  %v100_v17 = vld [vmem:[%s4019_s1 + $0xb8] sm:$0xff] }
   0x7   :  { %2091 = vmatpush.msra.mxu3 %v106_v5  ;;  %247 = vmatpush.msra.mxu1 %v106_v5  ;;  %v83_v18 = vld [vmem:[%s4019_s1 + $0x30] sm:$0xff]  ;;  %v82_v20 = vld [vmem:[%s4019_s1 + $0x28] sm:$0xff]  ;;  %v81_v22 = vld [vmem:[%s4019_s1 + $0x20] sm:$0xff] }
   0x8   :  { %2076 = vmatpush.msra.mxu2 %v89_v6  ;;  %207 = vmatpush.msra.mxu0 %v89_v6  ;;  %v99_v19 = vld [vmem:[%s4019_s1 + $0xb0] sm:$0xff]  ;;  %v98_v21 = vld [vmem:[%s4019_s1 + $0xa8] sm:$0xff]  ;;  %v97_v23 = vld [vmem:[%s4019_s1 + $0xa0] sm:$0xff] }
   0x9   :  { %2092 = vmatpush.msra.mxu3 %v105_v7  ;;  %248 = vmatpush.msra.mxu1 %v105_v7  ;;  %v80_v24 = vld [vmem:[%s4019_s1 + $0x18] sm:$0xff]  ;;  %v79_v26 = vld [vmem:[%s4019_s1 + $0x10] sm:$0xff]  ;;  %v78_v28 = vld [vmem:[%s4019_s1 + $0x8] sm:$0xff] }
   0xa   :  { %2077 = vmatpush.msra.mxu2 %v88_v8  ;;  %208 = vmatpush.msra.mxu0 %v88_v8  ;;  %v96_v25 = vld [vmem:[%s4019_s1 + $0x98] sm:$0xff]  ;;  %v95_v27 = vld [vmem:[%s4019_s1 + $0x90] sm:$0xff]  ;;  %v94_v29 = vld [vmem:[%s4019_s1 + $0x88] sm:$0xff] }
   0xb   :  { %2093 = vmatpush.msra.mxu3 %v104_v9  ;;  %249 = vmatpush.msra.mxu1 %v104_v9  ;;  %v77_v30 = vld [vmem:[%s4019_s1] sm:$0xff]  ;;  %v50_v33 = vld [vmem:[%s4018_s0 + $0xe8] sm:$0xff]  ;;  %v124_v34 = vld [vmem:[%s4019_s1 + $0x178] sm:$0xff] }
   0xc   :  { %2078 = vmatpush.msra.mxu2 %v87_v10  ;;  %209 = vmatpush.msra.mxu0 %v87_v10  ;;  %v93_v31 = vld [vmem:[%s4019_s1 + $0x80] sm:$0xff]  ;;  %v140_v35 = vld [vmem:[%s4019_s1 + $0x1f8] sm:$0xff]  ;;  %v123_v36 = vld [vmem:[%s4019_s1 + $0x170] sm:$0xff] }
   0xd   :  { %2094 = vmatpush.msra.mxu3 %v103_v11  ;;  %250 = vmatpush.msra.mxu1 %v103_v11  ;;  %v49_v32 = vld [vmem:[%s4018_s0 + $0xe0] sm:$0xff]  ;;  %v139_v37 = vld [vmem:[%s4019_s1 + $0x1f0] sm:$0xff]  ;;  %v22_v39 = vld [vmem:[%s4018_s0 + $0x8] sm:$0xff] }
   0xe   :  { %2079 = vmatpush.msra.mxu2 %v86_v12  ;;  %210 = vmatpush.msra.mxu0 %v86_v12  ;;  %v21_v38 = vld [vmem:[%s4018_s0] sm:$0xff] }
   0xf   :  { %2095 = vmatpush.msra.mxu3 %v102_v13  ;;  %251 = vmatpush.msra.mxu1 %v102_v13 }
  0x10   :  { %2080 = vmatpush.msra.mxu2 %v85_v14  ;;  %211 = vmatpush.msra.mxu0 %v85_v14 }
  0x11   :  { %2096 = vmatpush.msra.mxu3 %v101_v15  ;;  %252 = vmatpush.msra.mxu1 %v101_v15 }
  0x12   :  { %2081 = vmatpush.msra.mxu2 %v84_v16  ;;  %212 = vmatpush.msra.mxu0 %v84_v16 }
  0x13   :  { %2097 = vmatpush.msra.mxu3 %v100_v17  ;;  %253 = vmatpush.msra.mxu1 %v100_v17 }
  0x14   :  { %2082 = vmatpush.msra.mxu2 %v83_v18  ;;  %213 = vmatpush.msra.mxu0 %v83_v18 }
  0x15   :  { %2098 = vmatpush.msra.mxu3 %v99_v19  ;;  %254 = vmatpush.msra.mxu1 %v99_v19 }
  0x16   :  { %2083 = vmatpush.msra.mxu2 %v82_v20  ;;  %214 = vmatpush.msra.mxu0 %v82_v20 }
  0x17   :  { %2099 = vmatpush.msra.mxu3 %v98_v21  ;;  %255 = vmatpush.msra.mxu1 %v98_v21 }
  0x18   :  { %2084 = vmatpush.msra.mxu2 %v81_v22  ;;  %215 = vmatpush.msra.mxu0 %v81_v22 }
  0x19   :  { %2100 = vmatpush.msra.mxu3 %v97_v23  ;;  %256 = vmatpush.msra.mxu1 %v97_v23 }
  0x1a   :  { %2085 = vmatpush.msra.mxu2 %v80_v24  ;;  %216 = vmatpush.msra.mxu0 %v80_v24 }
  0x1b   :  { %2101 = vmatpush.msra.mxu3 %v96_v25  ;;  %257 = vmatpush.msra.mxu1 %v96_v25 }
  0x1c   :  { %2086 = vmatpush.msra.mxu2 %v79_v26  ;;  %217 = vmatpush.msra.mxu0 %v79_v26 }
  0x1d   :  { %2102 = vmatpush.msra.mxu3 %v95_v27  ;;  %258 = vmatpush.msra.mxu1 %v95_v27 }
  0x1e   :  { %2087 = vmatpush.msra.mxu2 %v78_v28  ;;  %218 = vmatpush.msra.mxu0 %v78_v28 }
  0x1f   :  { %2103 = vmatpush.msra.mxu3 %v94_v29  ;;  %259 = vmatpush.msra.mxu1 %v94_v29 }
  0x20   :  { %2088 = vmatpush.msra.mxu2 %v77_v30 }
  0x21   :  { %2104 = vmatpush.msra.mxu3 %v93_v31  ;;  %232 = vmatmul.f32.vlgmr.msra.gmra.mxu2 %v49_v32 }
  0x22   :  { %273 = vmatmul.f32.vlgmr.msra.gmra.mxu3 %v50_v33  ;;  %286 = vmatpush.msrb.mxu2 %v124_v34 }
  0x23   :  { %327 = vmatpush.msrb.mxu3 %v140_v35 }
  0x24   :  { %10 = vsyncpa [#allocation3], 0  ;;  %v122_v40 = vld [vmem:[%s4019_s1 + $0x168] sm:$0xff]  ;;  %219 = vmatpush.msra.mxu0 %v77_v30  ;;  %260 = vmatpush.msra.mxu1 %v93_v31  ;;  %v156_v42 = vld [vmem:[%s4019_s1 + $0x278] sm:$0xff]  ;;  %vm179_vm0 = vcmask 130048   ;;  %vm559_vm2 = vcmask 261120  }
  0x25   :  { %v138_v41 = vld [vmem:[%s4019_s1 + $0x1e8] sm:$0xff]  ;;  %287 = vmatpush.msrb.mxu2 %v123_v36  ;;  %328 = vmatpush.msrb.mxu3 %v139_v37  ;;  %v172_v43 = vld [vmem:[%s4019_s1 + $0x2f8] sm:$0xff]  ;;  %v121_v44 = vld [vmem:[%s4019_s1 + $0x160] sm:$0xff]  ;;  %s1997_s7 = sshll.u32 %s4023_s5, 4  ;;  %s2361_s8 = smov 896   ;;  %s1998_s7 = int_to_ptr.hbm [resolvable:$true] %s1997_s7 }
  0x26   :  { %v137_v45 = vld [vmem:[%s4019_s1 + $0x1e0] sm:$0xff]  ;;  %220 = vmatmul.f32.vlgmr.msra.gmra.mxu0 %v21_v38  ;;  %261 = vmatmul.f32.vlgmr.msra.gmra.mxu1 %v22_v39  ;;  %v56_v46 = vld [vmem:[%s4018_s0 + $0x118] sm:$0xff]  ;;  %v155_v50 = vld [vmem:[%s4019_s1 + $0x270] sm:$0xff]  ;;  %s2362_s9 = smov 56  }
  0x27   :  { %288 = vmatpush.msrb.mxu2 %v122_v40  ;;  %329 = vmatpush.msrb.mxu3 %v138_v41  ;;  %v57_v47 = vld [vmem:[%s4018_s0 + $0x120] sm:$0xff]  ;;  %v120_v48 = vld [vmem:[%s4019_s1 + $0x158] sm:$0xff]  ;;  %v171_v51 = vld [vmem:[%s4019_s1 + $0x2f0] sm:$0xff] }
  0x28   :  { %v136_v49 = vld [vmem:[%s4019_s1 + $0x1d8] sm:$0xff]  ;;  %368 = vmatpush.msrb.mxu0 %v156_v42  ;;  %409 = vmatpush.msrb.mxu1 %v172_v43  ;;  %v119_v52 = vld [vmem:[%s4019_s1 + $0x150] sm:$0xff]  ;;  %v154_v54 = vld [vmem:[%s4019_s1 + $0x268] sm:$0xff] }
  0x29   :  { %289 = vmatpush.msrb.mxu2 %v121_v44  ;;  %330 = vmatpush.msrb.mxu3 %v137_v45  ;;  %v135_v53 = vld [vmem:[%s4019_s1 + $0x1d0] sm:$0xff]  ;;  %v170_v55 = vld [vmem:[%s4019_s1 + $0x2e8] sm:$0xff]  ;;  %v153_v58 = vld [vmem:[%s4019_s1 + $0x260] sm:$0xff] }
  0x2a   :  { %235 = vmatmul.f32.gmra.mxu2 %v56_v46  ;;  %276 = vmatmul.f32.gmra.mxu3 %v57_v47  ;;  %v118_v56 = vld [vmem:[%s4019_s1 + $0x148] sm:$0xff]  ;;  %v169_v59 = vld [vmem:[%s4019_s1 + $0x2e0] sm:$0xff]  ;;  %v63_v62 = vld [vmem:[%s4018_s0 + $0x150] sm:$0xff] }
  0x2b   :  { %290 = vmatpush.msrb.mxu2 %v120_v48  ;;  %331 = vmatpush.msrb.mxu3 %v136_v49  ;;  %v134_v57 = vld [vmem:[%s4019_s1 + $0x1c8] sm:$0xff]  ;;  %v117_v60 = vld [vmem:[%s4019_s1 + $0x140] sm:$0xff]  ;;  %v28_v63 = vld [vmem:[%s4018_s0 + $0x38] sm:$0xff] }
  0x2c   :  { %369 = vmatpush.msrb.mxu0 %v155_v50  ;;  %410 = vmatpush.msrb.mxu1 %v171_v51  ;;  %v133_v61 = vld [vmem:[%s4019_s1 + $0x1c0] sm:$0xff]  ;;  %v116_v0 = vld [vmem:[%s4019_s1 + $0x138] sm:$0xff]  ;;  %v115_v4 = vld [vmem:[%s4019_s1 + $0x130] sm:$0xff] }
  0x2d   :  { %291 = vmatpush.msrb.mxu2 %v119_v52  ;;  %332 = vmatpush.msrb.mxu3 %v135_v53  ;;  %v64_v1 = vld [vmem:[%s4018_s0 + $0x158] sm:$0xff]  ;;  %v29_v5 = vld [vmem:[%s4018_s0 + $0x40] sm:$0xff]  ;;  %v131_v6 = vld [vmem:[%s4019_s1 + $0x1b0] sm:$0xff] }
  0x2e   :  { %370 = vmatpush.msrb.mxu0 %v154_v54  ;;  %411 = vmatpush.msrb.mxu1 %v170_v55  ;;  %v132_v2 = vld [vmem:[%s4019_s1 + $0x1b8] sm:$0xff]  ;;  %v151_v7 = vld [vmem:[%s4019_s1 + $0x250] sm:$0xff]  ;;  %v114_v8 = vld [vmem:[%s4019_s1 + $0x128] sm:$0xff] }
  0x2f   :  { %292 = vmatpush.msrb.mxu2 %v118_v56  ;;  %333 = vmatpush.msrb.mxu3 %v134_v57  ;;  %v152_v3 = vld [vmem:[%s4019_s1 + $0x258] sm:$0xff]  ;;  %v130_v10 = vld [vmem:[%s4019_s1 + $0x1a8] sm:$0xff]  ;;  %v113_v12 = vld [vmem:[%s4019_s1 + $0x120] sm:$0xff] }
  0x30   :  { %371 = vmatpush.msrb.mxu0 %v153_v58  ;;  %412 = vmatpush.msrb.mxu1 %v169_v59  ;;  %v168_v9 = vld [vmem:[%s4019_s1 + $0x2d8] sm:$0xff]  ;;  %v150_v11 = vld [vmem:[%s4019_s1 + $0x248] sm:$0xff]  ;;  %v167_v13 = vld [vmem:[%s4019_s1 + $0x2d0] sm:$0xff] }
  0x31   :  { %293 = vmatpush.msrb.mxu2 %v117_v60  ;;  %334 = vmatpush.msrb.mxu3 %v133_v61  ;;  %v70_v14 = vld [vmem:[%s4018_s0 + $0x188] sm:$0xff]  ;;  %v129_v15 = vld [vmem:[%s4019_s1 + $0x1a0] sm:$0xff]  ;;  %v112_v16 = vld [vmem:[%s4019_s1 + $0x118] sm:$0xff] }
  0x32   :  { %238 = vmatmul.f32.gmra.mxu2 %v63_v62  ;;  %223 = vmatmul.f32.gmra.mxu0 %v28_v63  ;;  %v149_v17 = vld [vmem:[%s4019_s1 + $0x240] sm:$0xff]  ;;  %v166_v18 = vld [vmem:[%s4019_s1 + $0x2c8] sm:$0xff]  ;;  %v35_v19 = vld [vmem:[%s4018_s0 + $0x70] sm:$0xff] }
  0x33   :  { %294 = vmatpush.msrb.mxu2 %v116_v0  ;;  %279 = vmatmul.f32.gmra.mxu3 %v64_v1  ;;  %v71_v20 = vld [vmem:[%s4018_s0 + $0x190] sm:$0xff]  ;;  %v128_v22 = vld [vmem:[%s4019_s1 + $0x198] sm:$0xff]  ;;  %v165_v24 = vld [vmem:[%s4019_s1 + $0x2c0] sm:$0xff] }
  0x34   :  { %335 = vmatpush.msrb.mxu3 %v132_v2  ;;  %372 = vmatpush.msrb.mxu0 %v152_v3  ;;  %v111_v21 = vld [vmem:[%s4019_s1 + $0x110] sm:$0xff]  ;;  %v148_v23 = vld [vmem:[%s4019_s1 + $0x238] sm:$0xff]  ;;  %v110_v25 = vld [vmem:[%s4019_s1 + $0x108] sm:$0xff] }
  0x35   :  { %295 = vmatpush.msrb.mxu2 %v115_v4  ;;  %264 = vmatmul.f32.gmra.mxu1 %v29_v5  ;;  %v36_v26 = vld [vmem:[%s4018_s0 + $0x78] sm:$0xff]  ;;  %v127_v27 = vld [vmem:[%s4019_s1 + $0x190] sm:$0xff]  ;;  %v109_v30 = vld [vmem:[%s4019_s1 + $0x100] sm:$0xff] }
  0x36   :  { %336 = vmatpush.msrb.mxu3 %v131_v6  ;;  %373 = vmatpush.msrb.mxu0 %v151_v7  ;;  %v147_v28 = vld [vmem:[%s4019_s1 + $0x230] sm:$0xff]  ;;  %v164_v29 = vld [vmem:[%s4019_s1 + $0x2b8] sm:$0xff]  ;;  %v126_v31 = vld [vmem:[%s4019_s1 + $0x188] sm:$0xff] }
  0x37   :  { %296 = vmatpush.msrb.mxu2 %v114_v8  ;;  %413 = vmatpush.msrb.mxu1 %v168_v9  ;;  %v146_v32 = vld [vmem:[%s4019_s1 + $0x228] sm:$0xff]  ;;  %v163_v33 = vld [vmem:[%s4019_s1 + $0x2b0] sm:$0xff]  ;;  %v125_v35 = vld [vmem:[%s4019_s1 + $0x180] sm:$0xff] }
  0x38   :  { %337 = vmatpush.msrb.mxu3 %v130_v10  ;;  %374 = vmatpush.msrb.mxu0 %v150_v11  ;;  %v23_v34 = vld [vmem:[%s4018_s0 + $0x10] sm:$0xff]  ;;  %v174_v36 = vld [vmem:[%s4019_s1 + $0x308] sm:$0xff]  ;;  %v145_v37 = vld [vmem:[%s4019_s1 + $0x220] sm:$0xff] }
  0x39   :  { %297 = vmatpush.msrb.mxu2 %v113_v12  ;;  %414 = vmatpush.msrb.mxu1 %v167_v13  ;;  %v162_v38 = vld [vmem:[%s4019_s1 + $0x2a8] sm:$0xff]  ;;  %v24_v40 = vld [vmem:[%s4018_s0 + $0x18] sm:$0xff]  ;;  %v161_v42 = vld [vmem:[%s4019_s1 + $0x2a0] sm:$0xff] }
  0x3a   :  { %241 = vmatmul.f32.gmra.mxu2 %v70_v14  ;;  %338 = vmatpush.msrb.mxu3 %v129_v15  ;;  %v42_v39 = vld [vmem:[%s4018_s0 + $0xa8] sm:$0xff]  ;;  %v144_v41 = vld [vmem:[%s4019_s1 + $0x218] sm:$0xff]  ;;  %v173_v43 = vld [vmem:[%s4019_s1 + $0x300] sm:$0xff] }
  0x3b   :  { %298 = vmatpush.msrb.mxu2 %v112_v16  ;;  %375 = vmatpush.msrb.mxu0 %v149_v17  ;;  %v43_v44 = vld [vmem:[%s4018_s0 + $0xb0] sm:$0xff]  ;;  %v160_v46 = vld [vmem:[%s4019_s1 + $0x298] sm:$0xff]  ;;  %v142_v47 = vld [vmem:[%s4019_s1 + $0x208] sm:$0xff] }
  0x3c   :  { %415 = vmatpush.msrb.mxu1 %v166_v18  ;;  %226 = vmatmul.f32.gmra.mxu0 %v35_v19  ;;  %v143_v45 = vld [vmem:[%s4019_s1 + $0x210] sm:$0xff]  ;;  %v30_v49 = vld [vmem:[%s4018_s0 + $0x48] sm:$0xff]  ;;  %v141_v50 = vld [vmem:[%s4019_s1 + $0x200] sm:$0xff] }
  0x3d   :  { %282 = vmatmul.f32.gmra.mxu3 %v71_v20  ;;  %299 = vmatpush.msrb.mxu2 %v111_v21  ;;  %v159_v48 = vld [vmem:[%s4019_s1 + $0x290] sm:$0xff]  ;;  %v158_v51 = vld [vmem:[%s4019_s1 + $0x288] sm:$0xff]  ;;  %v25_v52 = vld [vmem:[%s4018_s0 + $0x20] sm:$0xff] }
  0x3e   :  { %339 = vmatpush.msrb.mxu3 %v128_v22  ;;  %376 = vmatpush.msrb.mxu0 %v148_v23  ;;  %v31_v53 = vld [vmem:[%s4018_s0 + $0x50] sm:$0xff]  ;;  %v157_v54 = vld [vmem:[%s4019_s1 + $0x280] sm:$0xff]  ;;  %v26_v55 = vld [vmem:[%s4018_s0 + $0x28] sm:$0xff] }
  0x3f   :  { %416 = vmatpush.msrb.mxu1 %v165_v24  ;;  %300 = vmatpush.msrb.mxu2 %v110_v25  ;;  %v37_v56 = vld [vmem:[%s4018_s0 + $0x80] sm:$0xff]  ;;  %v32_v57 = vld [vmem:[%s4018_s0 + $0x58] sm:$0xff]  ;;  %v38_v58 = vld [vmem:[%s4018_s0 + $0x88] sm:$0xff] }
  0x40   :  { %267 = vmatmul.f32.gmra.mxu1 %v36_v26  ;;  %340 = vmatpush.msrb.mxu3 %v127_v27  ;;  %v33_v59 = vld [vmem:[%s4018_s0 + $0x60] sm:$0xff]  ;;  %v44_v60 = vld [vmem:[%s4018_s0 + $0xb8] sm:$0xff]  ;;  %v39_v61 = vld [vmem:[%s4018_s0 + $0x90] sm:$0xff] }
  0x41   :  { %377 = vmatpush.msrb.mxu0 %v147_v28  ;;  %417 = vmatpush.msrb.mxu1 %v164_v29  ;;  %v45_v62 = vld [vmem:[%s4018_s0 + $0xc0] sm:$0xff]  ;;  %v40_v63 = vld [vmem:[%s4018_s0 + $0x98] sm:$0xff]  ;;  %v51_v0 = vld [vmem:[%s4018_s0 + $0xf0] sm:$0xff] }
  0x42   :  { %301 = vmatpush.msrb.mxu2 %v109_v30  ;;  %341 = vmatpush.msrb.mxu3 %v126_v31  ;;  %v46_v1 = vld [vmem:[%s4018_s0 + $0xc8] sm:$0xff]  ;;  %v52_v2 = vld [vmem:[%s4018_s0 + $0xf8] sm:$0xff]  ;;  %v47_v3 = vld [vmem:[%s4018_s0 + $0xd0] sm:$0xff] }
  0x43   :  { %378 = vmatpush.msrb.mxu0 %v146_v32  ;;  %418 = vmatpush.msrb.mxu1 %v163_v33  ;;  %v58_v4 = vld [vmem:[%s4018_s0 + $0x128] sm:$0xff]  ;;  %v53_v5 = vld [vmem:[%s4018_s0 + $0x100] sm:$0xff]  ;;  %v59_v6 = vld [vmem:[%s4018_s0 + $0x130] sm:$0xff] }
  0x44   :  { %302 = vmatmul.f32.vlgmr.msrb.gmra.mxu2 %v23_v34  ;;  %342 = vmatpush.msrb.mxu3 %v125_v35  ;;  %v54_v7 = vld [vmem:[%s4018_s0 + $0x108] sm:$0xff]  ;;  %v65_v8 = vld [vmem:[%s4018_s0 + $0x160] sm:$0xff]  ;;  %v60_v9 = vld [vmem:[%s4018_s0 + $0x138] sm:$0xff] }
  0x45   :  { %464 = vmatpush.msra.mxu2 %v174_v36  ;;  %379 = vmatpush.msrb.mxu0 %v145_v37  ;;  %v66_v10 = vld [vmem:[%s4018_s0 + $0x168] sm:$0xff]  ;;  %v61_v11 = vld [vmem:[%s4018_s0 + $0x140] sm:$0xff]  ;;  %v72_v12 = vld [vmem:[%s4018_s0 + $0x198] sm:$0xff] }
  0x46   :  { %419 = vmatpush.msrb.mxu1 %v162_v38  ;;  %229 = vmatmul.f32.gmra.mxu0 %v42_v39  ;;  %v67_v13 = vld [vmem:[%s4018_s0 + $0x170] sm:$0xff]  ;;  %v73_v14 = vld [vmem:[%s4018_s0 + $0x1a0] sm:$0xff]  ;;  %v68_v15 = vld [vmem:[%s4018_s0 + $0x178] sm:$0xff] }
  0x47   :  { %343 = vmatmul.f32.vlgmr.msrb.gmra.mxu3 %v24_v40  ;;  %380 = vmatpush.msrb.mxu0 %v144_v41  ;;  %v27_v16 = vld [vmem:[%s4018_s0 + $0x30] sm:$0xff]  ;;  %v74_v17 = vld [vmem:[%s4018_s0 + $0x1a8] sm:$0xff]  ;;  %v41_v20 = vld [vmem:[%s4018_s0 + $0xa0] sm:$0xff] }
  0x48   :  { %420 = vmatpush.msrb.mxu1 %v161_v42  ;;  %465 = vmatpush.msra.mxu2 %v173_v43  ;;  %v75_v18 = vld [vmem:[%s4018_s0 + $0x1b0] sm:$0xff]  ;;  %v34_v19 = vld [vmem:[%s4018_s0 + $0x68] sm:$0xff]  ;;  %v48_v21 = vld [vmem:[%s4018_s0 + $0xd8] sm:$0xff] }
  0x49   :  { %270 = vmatmul.f32.gmra.mxu1 %v43_v44  ;;  %381 = vmatpush.msrb.mxu0 %v143_v45  ;;  %v55_v22 = vld [vmem:[%s4018_s0 + $0x110] sm:$0xff]  ;;  %v62_v24 = vld [vmem:[%s4018_s0 + $0x148] sm:$0xff]  ;;  %v69_v27 = vld [vmem:[%s4018_s0 + $0x180] sm:$0xff] }
  0x4a   :  { %421 = vmatpush.msrb.mxu1 %v160_v46  ;;  %v536_v26 = vld [vmem:[%s4021_s3 + $0xa8] sm:$0xff]  ;;  %v537_v29 = vld [vmem:[%s4021_s3 + $0xb0] sm:$0xff]  ;;  %v538_v30 = vld [vmem:[%s4021_s3 + $0xb8] sm:$0xff] }
  0x4b   :  { %382 = vmatpush.msrb.mxu0 %v142_v47  ;;  %596 = vmatpush.msra.mxu3 %v536_v26  ;;  %v76_v31 = vld [vmem:[%s4018_s0 + $0x1b8] sm:$0xff]  ;;  %v529_v33 = vld [vmem:[%s4021_s3 + $0x70] sm:$0xff]  ;;  %v531_v36 = vld [vmem:[%s4021_s3 + $0x80] sm:$0xff] }
  0x4c   :  { %422 = vmatpush.msrb.mxu1 %v159_v48  ;;  %305 = vmatmul.f32.gmra.mxu2 %v30_v49  ;;  %v530_v35 = vld [vmem:[%s4021_s3 + $0x78] sm:$0xff]  ;;  %v523_v44 = vld [vmem:[%s4021_s3 + $0x40] sm:$0xff]  ;;  %v524_v45 = vld [vmem:[%s4021_s3 + $0x48] sm:$0xff] }
  0x4d   :  { %383 = vmatpush.msrb.mxu0 %v141_v50  ;;  %597 = vmatpush.msra.mxu3 %v529_v33  ;;  %v522_v42 = vld [vmem:[%s4021_s3 + $0x38] sm:$0xff]  ;;  %v535_v26 = vld [vmem:[%s4021_s3 + $0xa0] sm:$0xff] }
  0x4e   :  { %423 = vmatpush.msrb.mxu1 %v158_v51  ;;  %384 = vmatmul.f32.vlgmr.msrb.gmra.mxu0 %v25_v52  ;;  %v515_v51 = vld [vmem:[%s4021_s3] sm:$0xff] }
  0x4f   :  { %346 = vmatmul.f32.gmra.mxu3 %v31_v53  ;;  %637 = vmatpush.msra.mxu0 %v537_v29 }
  0x50   :  { %424 = vmatpush.msrb.mxu1 %v157_v54  ;;  %598 = vmatpush.msra.mxu3 %v522_v42  ;;  %v516_v54 = vld [vmem:[%s4021_s3 + $0x8] sm:$0xff] }
  0x51   :  { %425 = vmatmul.f32.vlgmr.msrb.gmra.mxu1 %v26_v55  ;;  %638 = vmatpush.msra.mxu0 %v530_v35  ;;  %v517_v55 = vld [vmem:[%s4021_s3 + $0x10] sm:$0xff] }
  0x52   :  { %678 = vmatpush.msra.mxu1 %v538_v30  ;;  %599 = vmatpush.msra.mxu3 %v515_v51 }
  0x53   :  { %639 = vmatpush.msra.mxu0 %v523_v44 }
  0x54   :  { %308 = vmatmul.f32.gmra.mxu2 %v37_v56  ;;  %679 = vmatpush.msra.mxu1 %v531_v36  ;;  %v539_v56 = vld [vmem:[%s4021_s3 + $0xc0] sm:$0xff] }
  0x55   :  { %640 = vmatpush.msra.mxu0 %v516_v54  ;;  %719 = vmatpush.msrb.mxu2 %v539_v56 }
  0x56   :  { %387 = vmatmul.f32.gmra.mxu0 %v32_v57  ;;  %680 = vmatpush.msra.mxu1 %v524_v45 }
  0x57   :  { %349 = vmatmul.f32.gmra.mxu3 %v38_v58 }
  0x58   :  { %681 = vmatpush.msra.mxu1 %v517_v55 }
  0x59   :  { %428 = vmatmul.f32.gmra.mxu1 %v33_v59  ;;  %v532_v59 = vld [vmem:[%s4021_s3 + $0x88] sm:$0xff] }
  0x5a   :  { %720 = vmatpush.msrb.mxu2 %v532_v59 }
  0x5c   :  { %311 = vmatmul.f32.gmra.mxu2 %v44_v60  ;;  %v525_v60 = vld [vmem:[%s4021_s3 + $0x50] sm:$0xff] }
  0x5d   :  { %721 = vmatpush.msrb.mxu2 %v525_v60 }
  0x5e   :  { %390 = vmatmul.f32.gmra.mxu0 %v39_v61 }
  0x5f   :  { %352 = vmatmul.f32.gmra.mxu3 %v45_v62  ;;  %v518_v62 = vld [vmem:[%s4021_s3 + $0x18] sm:$0xff] }
  0x60   :  { %722 = vmatpush.msrb.mxu2 %v518_v62  ;;  %v528_v62 = vld [vmem:[%s4021_s3 + $0x68] sm:$0xff] }
  0x61   :  { %431 = vmatmul.f32.gmra.mxu1 %v40_v63 }
  0x64   :  { %314 = vmatmul.f32.gmra.mxu2 %v51_v0  ;;  %v540_v0 = vld [vmem:[%s4021_s3 + $0xc8] sm:$0xff] }
  0x65   :  { %760 = vmatpush.msrb.mxu3 %v540_v0 }
  0x66   :  { %393 = vmatmul.f32.gmra.mxu0 %v46_v1 }
  0x67   :  { %355 = vmatmul.f32.gmra.mxu3 %v52_v2  ;;  %v2941_v2 = vld [vmem:[%s4020_s2] ss:$0 sm:$0xff] }
  0x69   :  { %434 = vmatmul.f32.gmra.mxu1 %v47_v3 }
  0x6c   :  { %317 = vmatmul.f32.gmra.mxu2 %v58_v4 }
  0x6e   :  { %396 = vmatmul.f32.gmra.mxu0 %v53_v5  ;;  %v541_v5 = vld [vmem:[%s4021_s3 + $0xd0] sm:$0xff] }
  0x6f   :  { %358 = vmatmul.f32.gmra.mxu3 %v59_v6  ;;  %v542_v6 = vld [vmem:[%s4021_s3 + $0xd8] sm:$0xff]  ;;  %801 = vmatpush.msrb.mxu0 %v541_v5 }
  0x70   :  { %842 = vmatpush.msrb.mxu1 %v542_v6 }
  0x71   :  { %437 = vmatmul.f32.gmra.mxu1 %v54_v7 }
  0x72   :  { %843 = vmatpush.msrb.mxu1 %v535_v26  ;;  %v520_v26 = vld [vmem:[%s4021_s3 + $0x28] sm:$0xff] }
  0x74   :  { %320 = vmatmul.f32.gmra.mxu2 %v65_v8  ;;  %844 = vmatpush.msrb.mxu1 %v528_v62 }
  0x76   :  { %399 = vmatmul.f32.gmra.mxu0 %v60_v9 }
  0x77   :  { %361 = vmatmul.f32.gmra.mxu3 %v66_v10 }
  0x79   :  { %440 = vmatmul.f32.gmra.mxu1 %v61_v11 }
  0x7c   :  { %323 = vmatmul.f32.gmra.mxu2 %v72_v12 }
  0x7e   :  { %402 = vmatmul.f32.gmra.mxu0 %v67_v13 }
  0x7f   :  { %364 = vmatmul.f32.gmra.mxu3 %v73_v14 }
  0x81   :  { %443 = vmatmul.f32.gmra.mxu1 %v68_v15 }
  0x84   :  { %2009 = vmatmul.msk.f32.vlgmr.msra.gmra.mxu2 %vm179_vm0, %v27_v16  ;;  %v533_v16 = vld [vmem:[%s4021_s3 + $0x90] sm:$0xff] }
  0x85   :  { %761 = vmatpush.msrb.mxu3 %v533_v16 }
  0x86   :  { %405 = vmatmul.f32.gmra.mxu0 %v74_v17 }
  0x89   :  { %446 = vmatmul.f32.gmra.mxu1 %v75_v18 }
  0x8c   :  { %2010 = vmatmul.msk.f32.gmra.mxu2 %vm179_vm0, %v34_v19 }
  0x94   :  { %2011 = vmatmul.msk.f32.gmra.mxu2 %vm179_vm0, %v41_v20 }
  0x9c   :  { %2012 = vmatmul.msk.f32.gmra.mxu2 %vm179_vm0, %v48_v21 }
  0xa3   :  { %v221_v38 = vpop.f32.mrf.mxu0  ;;  %v262_v39 = vpop.f32.mrf.mxu1 }
  0xa4   :  { %2013 = vmatmul.msk.f32.gmra.mxu2 %vm179_vm0, %v55_v22  ;;  %v2851_v23 = vpop.f32.mrf.mxu2  ;;  %v222_v4 = vadd.f32 %v2941_v2, %v221_v38 }
  0xa5   :  { %v2883_v34 = vpop.f32.mrf.mxu3  ;;  %v234_v59 = vadd.f32 %v2941_v2, %v2851_v23 }
  0xa6   :  { %v263_v8 = vadd.f32 %v262_v39, %v222_v4 }
  0xac   :  { %2014 = vmatmul.msk.f32.gmra.mxu2 %vm179_vm0, %v62_v24  ;;  %v534_v24 = vld [vmem:[%s4021_s3 + $0x98] sm:$0xff] }
  0xad   :  { %v2857_v25 = vpop.f32.mrf.mxu2  ;;  %v2891_v40 = vpop.f32.mrf.mxu3  ;;  %802 = vmatpush.msrb.mxu0 %v534_v24 }
  0xaf   :  { %v224_v43 = vpop.f32.mrf.mxu0 }
  0xb0   :  { %v225_v11 = vadd.f32 %v2941_v2, %v224_v43 }
  0xb2   :  { %v265_v46 = vpop.f32.mrf.mxu1 }
  0xb3   :  { %v266_v14 = vadd.f32 %v265_v46, %v225_v11 }
  0xb4   :  { %2015 = vmatmul.msk.f32.gmra.mxu2 %vm179_vm0, %v69_v27 }
  0xb5   :  { %v2866_v28 = vpop.f32.mrf.mxu2 }
  0xb6   :  { %v2904_v48 = vpop.f32.mrf.mxu3 }
  0xb9   :  { %v227_v49 = vpop.f32.mrf.mxu0 }
  0xba   :  { %v228_v21 = vadd.f32 %v2941_v2, %v227_v49 }
  0xbc   :  { %2016 = vmatmul.msk.f32.gmra.mxu2 %vm179_vm0, %v76_v31 }
  0xbd   :  { %v2878_v32 = vpop.f32.mrf.mxu2  ;;  %v268_v52 = vpop.f32.mrf.mxu1 }
  0xbe   :  { %v269_v30 = vadd.f32 %v268_v52, %v228_v21 }
  0xc0   :  { %v2911_v53 = vpop.f32.mrf.mxu3 }
  0xc3   :  { %v230_v57 = vpop.f32.mrf.mxu0 }
  0xc4   :  { %v231_v36 = vadd.f32 %v2941_v2, %v230_v57 }
  0xc6   :  { %v271_v61 = vpop.f32.mrf.mxu1 }
  0xc7   :  { %v303_v37 = vpop.f32.mrf.mxu2  ;;  %v272_v44 = vadd.f32 %v271_v61, %v231_v36  ;;  %v527_v61 = vld [vmem:[%s4021_s3 + $0x60] sm:$0xff] }
  0xc8   :  { %v304_v12 = vadd.f32 %v303_v37, %v263_v8  ;;  %803 = vmatpush.msrb.mxu0 %v527_v61 }
  0xca   :  { %v344_v63 = vpop.f32.mrf.mxu3  ;;  %804 = vmatpush.msrb.mxu0 %v520_v26 }
  0xcb   :  { %v385_v3 = vpop.f32.mrf.mxu0  ;;  %v345_v15 = vadd.f32 %v344_v63, %v304_v12 }
  0xcd   :  { %v386_v22 = vadd.f32 %v385_v3, %v345_v15  ;;  %v275_v3 = vadd.f32 %v2883_v34, %v234_v59 }
  0xce   :  { %v426_v7 = vpop.f32.mrf.mxu1 }
  0xcf   :  { %v306_v41 = vpop.f32.mrf.mxu2  ;;  %v427_v31 = vadd.f32 %v426_v7, %v386_v22  ;;  %v240_v22 = vadd.f32 %v2941_v2, %v2866_v28 }
  0xd0   :  { %v307_v19 = vadd.f32 %v306_v41, %v266_v14 }
  0xd2   :  { %v347_v9 = vpop.f32.mrf.mxu3 }
  0xd3   :  { %v388_v13 = vpop.f32.mrf.mxu0  ;;  %v348_v27 = vadd.f32 %v347_v9, %v307_v19  ;;  %v237_v9 = vadd.f32 %v2941_v2, %v2857_v25  ;;  %v519_v25 = vld [vmem:[%s4021_s3 + $0x20] sm:$0xff] }
  0xd5   :  { %v389_v37 = vadd.f32 %v388_v13, %v348_v27  ;;  %v278_v15 = vadd.f32 %v2891_v40, %v237_v9  ;;  %v521_v40 = vld [vmem:[%s4021_s3 + $0x30] sm:$0xff] }
  0xd6   :  { %v429_v17 = vpop.f32.mrf.mxu1  ;;  %845 = vmatpush.msrb.mxu1 %v521_v40 }
  0xd7   :  { %v2902_v47 = vpop.f32.mrf.mxu2  ;;  %v430_v45 = vadd.f32 %v429_v17, %v389_v37 }
  0xd8   :  { %v310_v39 = vadd.f32 %v2902_v47, %v269_v30  ;;  %v526_v47 = vld [vmem:[%s4021_s3 + $0x58] sm:$0xff]  ;;  %v281_v30 = vadd.f32 %v2904_v48, %v240_v22 }
  0xd9   :  { %762 = vmatpush.msrb.mxu3 %v526_v47 }
  0xda   :  { %v350_v20 = vpop.f32.mrf.mxu3 }
  0xdb   :  { %v391_v29 = vpop.f32.mrf.mxu0  ;;  %v351_v46 = vadd.f32 %v350_v20, %v310_v39  ;;  %763 = vmatpush.msrb.mxu3 %v519_v25 }
  0xdd   :  { %v392_v54 = vadd.f32 %v391_v29, %v351_v46 }
  0xde   :  { %v432_v38 = vpop.f32.mrf.mxu1 }
  0xdf   :  { %v2906_v50 = vpop.f32.mrf.mxu2 }
  0xe0   :  { %v313_v55 = vadd.f32 %v2906_v50, %v272_v44  ;;  %v433_v50 = vadd.f32 %v432_v38, %v392_v54  ;;  %v243_v38 = vadd.f32 %v2941_v2, %v2878_v32 }
  0xe2   :  { %v353_v42 = vpop.f32.mrf.mxu3 }
  0xe3   :  { %v394_v49 = vpop.f32.mrf.mxu0  ;;  %v354_v0 = vadd.f32 %v353_v42, %v313_v55 }
  0xe5   :  { %v395_v6 = vadd.f32 %v394_v49, %v354_v0 }
  0xe6   :  { %v435_v57 = vpop.f32.mrf.mxu1 }
  0xe7   :  { %v2922_v58 = vpop.f32.mrf.mxu2  ;;  %v436_v34 = vadd.f32 %v435_v57, %v395_v6 }
  0xe8   :  { %v316_v7 = vadd.f32 %v2922_v58, %v275_v3 }
  0xea   :  { %v356_v63 = vpop.f32.mrf.mxu3 }
  0xeb   :  { %v397_v5 = vpop.f32.mrf.mxu0  ;;  %v357_v13 = vadd.f32 %v356_v63, %v316_v7 }
  0xed   :  { %v398_v17 = vadd.f32 %v397_v5, %v357_v13 }
  0xee   :  { %v438_v12 = vpop.f32.mrf.mxu1 }
  0xef   :  { %v2936_v1 = vpop.f32.mrf.mxu2 }
  0xf0   :  { %v319_v19 = vadd.f32 %v2936_v1, %v278_v15  ;;  %v439_v1 = vadd.f32 %v438_v12, %v398_v17 }
  0xf2   :  { %v359_v58 = vpop.f32.mrf.mxu3 }
  0xf3   :  { %v400_v21 = vpop.f32.mrf.mxu0  ;;  %v360_v27 = vadd.f32 %v359_v58, %v319_v19 }
  0xf6   :  { %v441_v28 = vpop.f32.mrf.mxu1 }
  0xf7   :  { %v2950_v10 = vpop.f32.mrf.mxu2 }
  0xf8   :  { %v322_v36 = vadd.f32 %v2950_v10, %v281_v30  ;;  %v284_v10 = vadd.f32 %v2911_v53, %v243_v38 }
  0xfe   :  { %v444_v46 = vpop.f32.mrf.mxu1 }
  0xff   :  { %v2956_v18 = vpop.f32.mrf.mxu2 }
 0x100   :  { %v325_v32 = vadd.f32 %v2956_v18, %v284_v10 }
 0x106   :  { %v447_v59 = vpop.f32.mrf.mxu1 }
 0x107   :  { %v467_v33 = vpop.f32.mrf.mxu2 }
 0x108   :  { %v468_v35 = vadd.f32 %v467_v33, %v427_v31  ;;  %v362_v33 = vpop.f32.mrf.mxu3 }
 0x109   :  { %v363_v44 = vadd.f32 %v362_v33, %v322_v36 }
 0x10a   :  { %vm491_vm1 = vcmp.gt.f32.partialorder %v468_v35, 0.0  ;;  %v499_v41 = vmul.f32 0.01, %v468_v35 }
 0x10c   :  { %v2967_v43 = vsel %vm491_vm1, %v468_v35, %v499_v41  ;;  %v401_v35 = vadd.f32 %v400_v21, %v360_v27  ;;  %v403_v41 = vpop.f32.mrf.mxu0 }
 0x10d   :  { %2017 = vmatmul.msk.f32.vlgmr.msra.gmra.mxu3 %vm559_vm2, %v2967_v43  ;;  %2025 = vmatmul.msk.f32.vlgmr.msra.gmra.mxu0 %vm559_vm2, %v2967_v43  ;;  %v404_v47 = vadd.f32 %v403_v41, %v363_v44 }
 0x10e   :  { %2033 = vmatmul.msk.f32.vlgmr.msra.gmra.mxu1 %vm559_vm2, %v2967_v43  ;;  %2041 = vmatmul.msk.f32.vlgmr.msrb.gmra.mxu2 %vm559_vm2, %v2967_v43  ;;  %v442_v42 = vadd.f32 %v441_v28, %v401_v35 }
 0x10f   :  { %v470_v51 = vpop.f32.mrf.mxu2 }
 0x110   :  { %v471_v52 = vadd.f32 %v470_v51, %v430_v45  ;;  %v365_v49 = vpop.f32.mrf.mxu3 }
 0x111   :  { %v366_v54 = vadd.f32 %v365_v49, %v325_v32 }
 0x112   :  { %vm492_vm3 = vcmp.gt.f32.partialorder %v471_v52, 0.0  ;;  %v500_v56 = vmul.f32 0.01, %v471_v52 }
 0x114   :  { %v2983_v60 = vsel %vm492_vm3, %v471_v52, %v500_v56  ;;  %v445_v52 = vadd.f32 %v444_v46, %v404_v47  ;;  %v406_v53 = vpop.f32.mrf.mxu0 }
 0x115   :  { %2018 = vmatmul.msk.f32.gmra.mxu3 %vm559_vm2, %v2983_v60  ;;  %2026 = vmatmul.msk.f32.gmra.mxu0 %vm559_vm2, %v2983_v60  ;;  %v407_v57 = vadd.f32 %v406_v53, %v366_v54 }
 0x116   :  { %2034 = vmatmul.msk.f32.gmra.mxu1 %vm559_vm2, %v2983_v60  ;;  %2042 = vmatmul.msk.f32.gmra.mxu2 %vm559_vm2, %v2983_v60 }
 0x117   :  { %v473_v23 = vpop.f32.mrf.mxu2  ;;  %v448_v62 = vadd.f32 %v447_v59, %v407_v57 }
 0x118   :  { %v474_v4 = vadd.f32 %v473_v23, %v433_v50 }
 0x11a   :  { %vm493_vm4 = vcmp.gt.f32.partialorder %v474_v4, 0.0  ;;  %v501_v8 = vmul.f32 0.01, %v474_v4 }
 0x11c   :  { %v3003_v11 = vsel %vm493_vm4, %v474_v4, %v501_v8 }
 0x11d   :  { %2019 = vmatmul.msk.f32.gmra.mxu3 %vm559_vm2, %v3003_v11  ;;  %2027 = vmatmul.msk.f32.gmra.mxu0 %vm559_vm2, %v3003_v11 }
 0x11e   :  { %2035 = vmatmul.msk.f32.gmra.mxu1 %vm559_vm2, %v3003_v11  ;;  %2043 = vmatmul.msk.f32.gmra.mxu2 %vm559_vm2, %v3003_v11 }
 0x11f   :  { %v476_v14 = vpop.f32.mrf.mxu2 }
 0x120   :  { %v477_v16 = vadd.f32 %v476_v14, %v436_v34 }
 0x122   :  { %vm494_vm5 = vcmp.gt.f32.partialorder %v477_v16, 0.0  ;;  %v502_v20 = vmul.f32 0.01, %v477_v16 }
 0x124   :  { %v3020_v24 = vsel %vm494_vm5, %v477_v16, %v502_v20 }
 0x125   :  { %2020 = vmatmul.msk.f32.gmra.mxu3 %vm559_vm2, %v3020_v24  ;;  %2028 = vmatmul.msk.f32.gmra.mxu0 %vm559_vm2, %v3020_v24 }
 0x126   :  { %2036 = vmatmul.msk.f32.gmra.mxu1 %vm559_vm2, %v3020_v24  ;;  %2044 = vmatmul.msk.f32.gmra.mxu2 %vm559_vm2, %v3020_v24 }
 0x127   :  { %v479_v29 = vpop.f32.mrf.mxu2 }
 0x128   :  { %v480_v31 = vadd.f32 %v479_v29, %v439_v1 }
 0x12a   :  { %vm495_vm6 = vcmp.gt.f32.partialorder %v480_v31, 0.0  ;;  %v503_v37 = vmul.f32 0.01, %v480_v31 }
 0x12c   :  { %v511_v39 = vsel %vm495_vm6, %v480_v31, %v503_v37 }
 0x12d   :  { %2021 = vmatmul.msk.f32.gmra.mxu3 %vm559_vm2, %v511_v39  ;;  %2029 = vmatmul.msk.f32.gmra.mxu0 %vm559_vm2, %v511_v39 }
 0x12e   :  { %2037 = vmatmul.msk.f32.gmra.mxu1 %vm559_vm2, %v511_v39  ;;  %2045 = vmatmul.msk.f32.gmra.mxu2 %vm559_vm2, %v511_v39 }
 0x12f   :  { %v482_v48 = vpop.f32.mrf.mxu2 }
 0x130   :  { %v483_v45 = vadd.f32 %v482_v48, %v442_v42 }
 0x132   :  { %vm496_vm7 = vcmp.gt.f32.partialorder %v483_v45, 0.0  ;;  %v504_v2 = vmul.f32 0.01, %v483_v45 }
 0x134   :  { %v512_v51 = vsel %vm496_vm7, %v483_v45, %v504_v2 }
 0x135   :  { %2022 = vmatmul.msk.f32.gmra.mxu3 %vm559_vm2, %v512_v51  ;;  %2030 = vmatmul.msk.f32.gmra.mxu0 %vm559_vm2, %v512_v51 }
 0x136   :  { %2038 = vmatmul.msk.f32.gmra.mxu1 %vm559_vm2, %v512_v51  ;;  %2046 = vmatmul.msk.f32.gmra.mxu2 %vm559_vm2, %v512_v51 }
 0x137   :  { %v485_v55 = vpop.f32.mrf.mxu2 }
 0x138   :  { %v486_v56 = vadd.f32 %v485_v55, %v445_v52 }
 0x13a   :  { %vm497_vm8 = vcmp.gt.f32.partialorder %v486_v56, 0.0  ;;  %v505_v18 = vmul.f32 0.01, %v486_v56 }
 0x13c   :  { %v513_v61 = vsel %vm497_vm8, %v486_v56, %v505_v18 }
 0x13d   :  { %2023 = vmatmul.msk.f32.gmra.mxu3 %vm559_vm2, %v513_v61  ;;  %2031 = vmatmul.msk.f32.gmra.mxu0 %vm559_vm2, %v513_v61 }
 0x13e   :  { %2039 = vmatmul.msk.f32.gmra.mxu1 %vm559_vm2, %v513_v61  ;;  %2047 = vmatmul.msk.f32.gmra.mxu2 %vm559_vm2, %v513_v61 }
 0x13f   :  { %v488_v63 = vpop.f32.mrf.mxu2 }
 0x140   :  { %v489_v50 = vadd.f32 %v488_v63, %v448_v62 }
 0x142   :  { %vm498_vm9 = vcmp.gt.f32.partialorder %v489_v50, 0.0  ;;  %v506_v0 = vmul.f32 0.01, %v489_v50 }
 0x144   :  { %v514_v23 = vsel %vm498_vm9, %v489_v50, %v506_v0 }
 0x145   :  { %2024 = vmatmul.msk.f32.gmra.mxu3 %vm559_vm2, %v514_v23  ;;  %2032 = vmatmul.msk.f32.gmra.mxu0 %vm559_vm2, %v514_v23 }
 0x146   :  { %2040 = vmatmul.msk.f32.gmra.mxu1 %vm559_vm2, %v514_v23  ;;  %2048 = vmatmul.msk.f32.gmra.mxu2 %vm559_vm2, %v514_v23 }
 0x14d   :  { %2049 = vmatmul.msk.f32.vlgmr.msrb.gmra.mxu3 %vm559_vm2, %v2967_v43  ;;  %2057 = vmatmul.msk.f32.vlgmr.msrb.gmra.mxu0 %vm559_vm2, %v2967_v43 }
 0x14e   :  { %2065 = vmatmul.msk.f32.vlgmr.msrb.gmra.mxu1 %vm559_vm2, %v2967_v43  ;;  %v543_v43 = vld [vmem:[%s4022_s4] sm:$0x7f] }
 0x14f   :  { %v3099_v3 = vperm.slane %v543_v43, 2  ;;  %v3103_v9 = vperm.slane %v543_v43, 0  ;;  %v3105_v12 = vperm.slane %v543_v43, 3 }
 0x155   :  { %2050 = vmatmul.msk.f32.gmra.mxu3 %vm559_vm2, %v2983_v60  ;;  %2058 = vmatmul.msk.f32.gmra.mxu0 %vm559_vm2, %v2983_v60 }
 0x156   :  { %2066 = vmatmul.msk.f32.gmra.mxu1 %vm559_vm2, %v2983_v60  ;;  %v3097_v60 = vperm.slane %v543_v43, 1 }
 0x15d   :  { %2051 = vmatmul.msk.f32.gmra.mxu3 %vm559_vm2, %v3003_v11  ;;  %2059 = vmatmul.msk.f32.gmra.mxu0 %vm559_vm2, %v3003_v11 }
 0x15e   :  { %2067 = vmatmul.msk.f32.gmra.mxu1 %vm559_vm2, %v3003_v11 }
 0x165   :  { %2052 = vmatmul.msk.f32.gmra.mxu3 %vm559_vm2, %v3020_v24  ;;  %2060 = vmatmul.msk.f32.gmra.mxu0 %vm559_vm2, %v3020_v24 }
 0x166   :  { %2068 = vmatmul.msk.f32.gmra.mxu1 %vm559_vm2, %v3020_v24 }
 0x16d   :  { %2053 = vmatmul.msk.f32.gmra.mxu3 %vm559_vm2, %v511_v39  ;;  %2061 = vmatmul.msk.f32.gmra.mxu0 %vm559_vm2, %v511_v39 }
 0x16e   :  { %2069 = vmatmul.msk.f32.gmra.mxu1 %vm559_vm2, %v511_v39 }
 0x175   :  { %2054 = vmatmul.msk.f32.gmra.mxu3 %vm559_vm2, %v512_v51  ;;  %2062 = vmatmul.msk.f32.gmra.mxu0 %vm559_vm2, %v512_v51 }
 0x176   :  { %2070 = vmatmul.msk.f32.gmra.mxu1 %vm559_vm2, %v512_v51 }
 0x17d   :  { %2055 = vmatmul.msk.f32.gmra.mxu3 %vm559_vm2, %v513_v61  ;;  %2063 = vmatmul.msk.f32.gmra.mxu0 %vm559_vm2, %v513_v61 }
 0x17e   :  { %2071 = vmatmul.msk.f32.gmra.mxu1 %vm559_vm2, %v513_v61 }
 0x185   :  { %2056 = vmatmul.msk.f32.gmra.mxu3 %vm559_vm2, %v514_v23  ;;  %2064 = vmatmul.msk.f32.gmra.mxu0 %vm559_vm2, %v514_v23 }
 0x186   :  { %2072 = vmatmul.msk.f32.gmra.mxu1 %vm559_vm2, %v514_v23 }
 0x18a   :  { %v642_v4 = vpop.f32.mrf.mxu0 }
 0x18b   :  { %v643_v5 = vadd.f32 %v642_v4, %v3097_v60  ;;  %v683_v6 = vpop.f32.mrf.mxu1 }
 0x18c   :  { %v684_v7 = vadd.f32 %v683_v6, %v3099_v3 }
 0x18d   :  { %v872_v8 = vsub.f32 0.0, %v643_v5 }
 0x18e   :  { %v873_v11 = vsub.f32 0.0, %v684_v7 }
 0x18f   :  { %v929_v34 = vmul.f32 1.442695, %v872_v8 }
 0x190   :  { %v931_v13 = vmul.f32 1.442695, %v873_v11  ;;  %v601_v25 = vpop.f32.mrf.mxu3 }
 0x191   :  { %2109 = vpow2.f32 %v929_v34  ;;  %v602_v58 = vadd.f32 %v601_v25, %v3103_v9  ;;  %v724_v14 = vpop.f32.mrf.mxu2 }
 0x192   :  { %2111 = vpow2.f32 %v931_v13  ;;  %v725_v15 = vadd.f32 %v724_v14, %v3105_v12  ;;  %v645_v16 = vpop.f32.mrf.mxu0 }
 0x193   :  { %v871_v17 = vsub.f32 0.0, %v602_v58  ;;  %v646_v19 = vadd.f32 %v645_v16, %v3097_v60  ;;  %v686_v20 = vpop.f32.mrf.mxu1 }
 0x194   :  { %v874_v21 = vsub.f32 0.0, %v725_v15  ;;  %v687_v22 = vadd.f32 %v686_v20, %v3099_v3 }
 0x195   :  { %v927_v24 = vmul.f32 1.442695, %v871_v17  ;;  %v879_v26 = vsub.f32 0.0, %v646_v19 }
 0x196   :  { %v933_v40 = vmul.f32 1.442695, %v874_v21  ;;  %v880_v1 = vsub.f32 0.0, %v687_v22 }
 0x197   :  { %v2110_v27 = vpop.eup %2109  ;;  %2113 = vpow2.f32 %v927_v24  ;;  %v943_v28 = vmul.f32 1.442695, %v879_v26 }
 0x198   :  { %v2112_v29 = vpop.eup %2111  ;;  %v3111_v30 = vadd.f32 1.0, %v2110_v27  ;;  %2115 = vpow2.f32 %v933_v40  ;;  %v945_v31 = vmul.f32 1.442695, %v880_v1  ;;  %v604_v33 = vpop.f32.mrf.mxu3 }
 0x199   :  { %v3113_v35 = vadd.f32 1.0, %v2112_v29  ;;  %2117 = vpow2.f32 %v943_v28  ;;  %v605_v36 = vadd.f32 %v604_v33, %v3103_v9  ;;  %v727_v37 = vpop.f32.mrf.mxu2 }
 0x19a   :  { %2119 = vrcp.f32 %v3111_v30  ;;  %v648_v38 = vpop.f32.mrf.mxu0  ;;  %v1121_v39 = vand.u32 2147483648, %v3111_v30  ;;  %v1119_v44 = vand.u32 2147483647, %v3111_v30  ;;  %v728_v47 = vadd.f32 %v727_v37, %v3105_v12 }
 0x19b   :  { %2121 = vrcp.f32 %v3113_v35  ;;  %v878_v41 = vsub.f32 0.0, %v605_v36  ;;  %v1136_v48 = vand.u32 2147483648, %v3113_v35  ;;  %v1134_v45 = vand.u32 2147483647, %v3113_v35  ;;  %v689_v2 = vpop.f32.mrf.mxu1 }
 0x19c   :  { %2123 = vpow2.f32 %v945_v31  ;;  %v3126_v32 = vadd.f32 %v648_v38, %v3097_v60  ;;  %vm1115_vm10 = vweird.f32 %v3111_v30  ;;  %v1122_v54 = vor.u32 1.1754944e-38, %v1121_v39 }
 0x19d   :  { %v2114_v42 = vpop.eup %2113  ;;  %vm1130_vm11 = vweird.f32 %v3113_v35  ;;  %v941_v53 = vmul.f32 1.442695, %v878_v41  ;;  %vm3134_vm12 = vcmp.eq.f32.partialorder %v1119_v44, 8.507059e+37  ;;  %v1137_v18 = vor.u32 1.1754944e-38, %v1136_v48 }
 0x19e   :  { %v2116_v10 = vpop.eup %2115  ;;  %v3122_v46 = vadd.f32 1.0, %v2114_v42  ;;  %v3140_v59 = vadd.f32 %v689_v2, %v3099_v3  ;;  %vm3143_vm13 = vcmp.eq.f32.partialorder %v1134_v45, 8.507059e+37  ;;  %v881_v0 = vsub.f32 0.0, %v728_v47 }
 0x19f   :  { %v2118_v49 = vpop.eup %2117  ;;  %v3129_v51 = vadd.f32 1.0, %v2116_v10  ;;  %v886_v23 = vsub.f32 0.0, %v3126_v32 }
 0x1a0   :  { %v2120_v52 = vpop.eup %2119  ;;  %2125 = vrcp.f32 %v3122_v46  ;;  %v1106_v50 = vand.u32 2147483648, %v3122_v46  ;;  %v1104_v4 = vand.u32 2147483647, %v3122_v46  ;;  %v3151_v6 = vadd.f32 1.0, %v2118_v49 }
 0x1a1   :  { %v2122_v55 = vpop.eup %2121  ;;  %v1111_v56 = vmul.f32 %v2120_v52, %v3111_v30  ;;  %2127 = vrcp.f32 %v3129_v51  ;;  %v1149_v5 = vand.u32 2147483647, %v3129_v51  ;;  %v1151_v8 = vand.u32 2147483648, %v3129_v51 }
 0x1a2   :  { %v2124_v61 = vpop.eup %2123  ;;  %v1126_v62 = vmul.f32 %v2122_v55, %v3113_v35  ;;  %2129 = vpow2.f32 %v941_v53  ;;  %vm1116_vm14 = vweird.f32 %v2120_v52  ;;  %vm1100_vm15 = vweird.f32 %v3122_v46 }
 0x1a3   :  { %v1112_v43 = vsub.f32 1.0, %v1111_v56  ;;  %v3154_v11 = vadd.f32 1.0, %v2124_v61  ;;  %2131 = vrcp.f32 %v3151_v6  ;;  %vm1131_vm1 = vweird.f32 %v2122_v55  ;;  %vm1117_vm4 = vmor %vm1115_vm10, %vm1116_vm14  ;;  %v730_v61 = vpop.f32.mrf.mxu2 }
 0x1a4   :  { %v1127_v7 = vsub.f32 1.0, %v1126_v62  ;;  %v1107_v58 = vor.u32 1.1754944e-38, %v1106_v50  ;;  %vm1145_vm2 = vweird.f32 %v3129_v51  ;;  %vm3160_vm3 = vcmp.eq.f32.partialorder %v1104_v4, 8.507059e+37  ;;  %vm1132_vm6 = vmor %vm1130_vm11, %vm1131_vm1  ;;  %v651_v62 = vpop.f32.mrf.mxu0 }
 0x1a5   :  { %v1113_v34 = vmul.f32 %v2120_v52, %v1112_v43  ;;  %2133 = vrcp.f32 %v3154_v11  ;;  %v947_v19 = vmul.f32 1.442695, %v881_v0  ;;  %vm3168_vm5 = vcmp.eq.f32.partialorder %v1149_v5, 8.507059e+37  ;;  %v692_v0 = vpop.f32.mrf.mxu1 }
 0x1a6   :  { %v2126_v13 = vpop.eup %2125  ;;  %v1128_v25 = vmul.f32 %v2122_v55, %v1127_v7  ;;  %v1152_v24 = vor.u32 1.1754944e-38, %v1151_v8  ;;  %v1224_v26 = vand.u32 2147483647, %v3151_v6  ;;  %v1226_v27 = vand.u32 2147483648, %v3151_v6 }
 0x1a7   :  { %v2128_v14 = vpop.eup %2127  ;;  %v1114_v15 = vadd.f32 %v2120_v52, %v1113_v34  ;;  %v1096_v16 = vmul.f32 %v2126_v13, %v3122_v46  ;;  %vm1101_vm7 = vweird.f32 %v2126_v13  ;;  %vm1220_vm8 = vweird.f32 %v3151_v6 }
 0x1a8   :  { %v1129_v20 = vadd.f32 %v2122_v55, %v1128_v25  ;;  %v1141_v21 = vmul.f32 %v2128_v14, %v3129_v51  ;;  %v2130_v28 = vpop.eup %2129  ;;  %v1239_v33 = vand.u32 2147483647, %v3154_v11  ;;  %v1241_v38 = vand.u32 2147483648, %v3154_v11 }
 0x1a9   :  { %v1118_v40 = vsel %vm1117_vm4, %v2120_v52, %v1114_v15  ;;  %v1097_v1 = vsub.f32 1.0, %v1096_v16  ;;  %v2132_v36 = vpop.eup %2131  ;;  %v3184_v39 = vadd.f32 1.0, %v2130_v28  ;;  %vm1146_vm9 = vweird.f32 %v2128_v14  ;;  %v607_v52 = vpop.f32.mrf.mxu3 }
 0x1aa   :  { %v1123_v29 = vsel %vm3134_vm12, %v1122_v54, %v1118_v40  ;;  %v1133_v30 = vsel %vm1132_vm6, %v2122_v55, %v1129_v20  ;;  %v1142_v31 = vsub.f32 1.0, %v1141_v21  ;;  %v1216_v42 = vmul.f32 %v2132_v36, %v3151_v6  ;;  %vm1102_vm12 = vmor %vm1100_vm15, %vm1101_vm7 }
 0x1ab   :  { %1936 = vst [vmem:[#allocation2 + $0x8] sm:$0xff] %v1123_v29  ;;  %v1138_v35 = vsel %vm3143_vm13, %v1137_v18, %v1133_v30  ;;  %v1098_v37 = vmul.f32 %v2126_v13, %v1097_v1  ;;  %vm3187_vm10 = vcmp.eq.f32.partialorder %v1224_v26, 8.507059e+37  ;;  %v2134_v48 = vpop.eup %2133  ;;  %v1227_v45 = vor.u32 1.1754944e-38, %v1226_v27  ;;  %vm1147_vm14 = vmor %vm1145_vm2, %vm1146_vm9 }
 0x1ac   :  { %1937 = vst [vmem:[#allocation2 + $0x10] sm:$0xff] %v1138_v35  ;;  %v1143_v41 = vmul.f32 %v2128_v14, %v1142_v31  ;;  %vm1235_vm11 = vweird.f32 %v3154_v11  ;;  %2135 = vrcp.f32 %v3184_v39  ;;  %v1217_v2 = vsub.f32 1.0, %v1216_v42 }
 0x1ad   :  { %v1099_v10 = vadd.f32 %v2126_v13, %v1098_v37  ;;  %vm1221_vm13 = vweird.f32 %v2132_v36  ;;  %v1231_v49 = vmul.f32 %v2134_v48, %v3154_v11  ;;  %vm3200_vm1 = vcmp.eq.f32.partialorder %v1239_v33, 8.507059e+37 }
 0x1ae   :  { %v1144_v47 = vadd.f32 %v2128_v14, %v1143_v41  ;;  %v1242_v55 = vor.u32 1.1754944e-38, %v1241_v38  ;;  %2137 = vpow2.f32 %v947_v19  ;;  %v1218_v57 = vmul.f32 %v2132_v36, %v1217_v2  ;;  %vm1222_vm2 = vmor %vm1220_vm8, %vm1221_vm13 }
 0x1af   :  { %v1103_v54 = vsel %vm1102_vm12, %v2126_v13, %v1099_v10  ;;  %v1232_v18 = vsub.f32 1.0, %v1231_v49  ;;  %vm1236_vm15 = vweird.f32 %v2134_v48  ;;  %v1209_v51 = vand.u32 2147483647, %v3184_v39 }
 0x1b0   :  { %v1108_v46 = vsel %vm3160_vm3, %v1107_v58, %v1103_v54  ;;  %v1148_v56 = vsel %vm1147_vm14, %v2128_v14, %v1144_v47  ;;  %v957_v50 = vmul.f32 1.442695, %v886_v23  ;;  %v1219_v43 = vadd.f32 %v2132_v36, %v1218_v57  ;;  %vm1237_vm3 = vmor %vm1235_vm11, %vm1236_vm15 }
 0x1b1   :  { %1935 = vst [vmem:[#allocation2] sm:$0xff] %v1108_v46  ;;  %v1153_v63 = vsel %vm3168_vm5, %v1152_v24, %v1148_v56  ;;  %v1233_v4 = vmul.f32 %v2134_v48, %v1232_v18  ;;  %v887_v5 = vsub.f32 0.0, %v3140_v59  ;;  %v608_v7 = vadd.f32 %v607_v52, %v3103_v9  ;;  %v610_v11 = vpop.f32.mrf.mxu3 }
 0x1b2   :  { %1938 = vst [vmem:[#allocation2 + $0x18] sm:$0xff] %v1153_v63  ;;  %v2136_v8 = vpop.eup %2135  ;;  %v1211_v34 = vand.u32 2147483648, %v3184_v39  ;;  %2139 = vpow2.f32 %v957_v50  ;;  %v731_v13 = vadd.f32 %v730_v61, %v3105_v12  ;;  %v652_v32 = vadd.f32 %v651_v62, %v3097_v60  ;;  %v733_v61 = vpop.f32.mrf.mxu2 }
 0x1b3   :  { %v1223_v23 = vsel %vm1222_vm2, %v2132_v36, %v1219_v43  ;;  %v1234_v25 = vadd.f32 %v2134_v48, %v1233_v4  ;;  %v1201_v58 = vmul.f32 %v2136_v8, %v3184_v39  ;;  %v693_v59 = vadd.f32 %v692_v0, %v3099_v3  ;;  %v654_v62 = vpop.f32.mrf.mxu0 }
 0x1b4   :  { %v2138_v14 = vpop.eup %2137  ;;  %v1228_v15 = vsel %vm3187_vm10, %v1227_v45, %v1223_v23  ;;  %v959_v6 = vmul.f32 1.442695, %v887_v5  ;;  %v885_v16 = vsub.f32 0.0, %v608_v7  ;;  %v888_v17 = vsub.f32 0.0, %v731_v13 }
 0x1b5   :  { %1943 = vst [vmem:[#allocation2 + $0x40] sm:$0xff] %v1228_v15  ;;  %v1238_v19 = vsel %vm1237_vm3, %v2134_v48, %v1234_v25  ;;  %v1202_v20 = vsub.f32 1.0, %v1201_v58  ;;  %v3226_v21 = vadd.f32 1.0, %v2138_v14  ;;  %v893_v22 = vsub.f32 0.0, %v652_v32 }
 0x1b6   :  { %v1243_v24 = vsel %vm3200_vm1, %v1242_v55, %v1238_v19  ;;  %2141 = vpow2.f32 %v959_v6  ;;  %v955_v26 = vmul.f32 1.442695, %v885_v16  ;;  %v961_v40 = vmul.f32 1.442695, %v888_v17 }
 0x1b7   :  { %1944 = vst [vmem:[#allocation2 + $0x48] sm:$0xff] %v1243_v24  ;;  %v1203_v1 = vmul.f32 %v2136_v8, %v1202_v20  ;;  %vm1206_vm4 = vweird.f32 %v2136_v8  ;;  %2143 = vrcp.f32 %v3226_v21  ;;  %v971_v28 = vmul.f32 1.442695, %v893_v22 }
 0x1b8   :  { %v2140_v27 = vpop.eup %2139  ;;  %2145 = vpow2.f32 %v955_v26  ;;  %v894_v29 = vsub.f32 0.0, %v693_v59  ;;  %vm1205_vm5 = vweird.f32 %v3184_v39  ;;  %vm1210_vm7 = vcmp.eq.f32.partialorder %v1209_v51, 8.507059e+37 }
 0x1b9   :  { %v1204_v30 = vadd.f32 %v2136_v8, %v1203_v1  ;;  %v3232_v31 = vadd.f32 1.0, %v2140_v27  ;;  %2147 = vpow2.f32 %v961_v40  ;;  %vm1207_vm6 = vmor %vm1205_vm5, %vm1206_vm4  ;;  %v1212_v33 = vor.u32 1.1754944e-38, %v1211_v34 }
 0x1ba   :  { %2149 = vpow2.f32 %v971_v28  ;;  %v611_v36 = vadd.f32 %v610_v11, %v3103_v9  ;;  %v1254_v37 = vand.u32 2147483647, %v3226_v21  ;;  %v1256_v38 = vand.u32 2147483648, %v3226_v21 }
 0x1bb   :  { %v1208_v35 = vsel %vm1207_vm6, %v2136_v8, %v1204_v30  ;;  %2151 = vrcp.f32 %v3232_v31  ;;  %v973_v44 = vmul.f32 1.442695, %v894_v29  ;;  %vm1250_vm8 = vweird.f32 %v3226_v21 }
 0x1bc   :  { %v2142_v41 = vpop.eup %2141  ;;  %v1213_v42 = vsel %vm1210_vm7, %v1212_v33, %v1208_v35  ;;  %v892_v39 = vsub.f32 0.0, %v611_v36  ;;  %v1329_v2 = vand.u32 2147483647, %v3232_v31  ;;  %vm3243_vm9 = vcmp.eq.f32.partialorder %v1254_v37, 8.507059e+37 }
 0x1bd   :  { %v2144_v48 = vpop.eup %2143  ;;  %1942 = vst [vmem:[#allocation2 + $0x38] sm:$0xff] %v1213_v42  ;;  %v3238_v10 = vadd.f32 1.0, %v2142_v41  ;;  %v1257_v53 = vor.u32 1.1754944e-38, %v1256_v38  ;;  %v1331_v55 = vand.u32 2147483648, %v3232_v31  ;;  %vm1325_vm11 = vweird.f32 %v3232_v31 }
 0x1be   :  { %v2146_v45 = vpop.eup %2145  ;;  %v1246_v47 = vmul.f32 %v2144_v48, %v3226_v21  ;;  %v969_v49 = vmul.f32 1.442695, %v892_v39  ;;  %vm1251_vm10 = vweird.f32 %v2144_v48  ;;  %vm3257_vm12 = vcmp.eq.f32.partialorder %v1329_v2, 8.507059e+37  ;;  %v695_v39 = vpop.f32.mrf.mxu1 }
 0x1bf   :  { %v2148_v52 = vpop.eup %2147  ;;  %2153 = vrcp.f32 %v3238_v10  ;;  %v3249_v57 = vadd.f32 1.0, %v2146_v45  ;;  %v1344_v4 = vand.u32 2147483647, %v3238_v10  ;;  %v1346_v5 = vand.u32 2147483648, %v3238_v10  ;;  %vm1252_vm14 = vmor %vm1250_vm8, %vm1251_vm10 }
 0x1c0   :  { %v2150_v46 = vpop.eup %2149  ;;  %v1247_v56 = vsub.f32 1.0, %v1246_v47  ;;  %v3251_v18 = vadd.f32 1.0, %v2148_v52  ;;  %2155 = vpow2.f32 %v973_v44  ;;  %v3266_v7 = vadd.f32 %v733_v61, %v3105_v12 }
 0x1c1   :  { %v2152_v63 = vpop.eup %2151  ;;  %v3254_v51 = vadd.f32 1.0, %v2150_v46  ;;  %2157 = vpow2.f32 %v969_v49  ;;  %v3269_v8 = vadd.f32 %v654_v62, %v3097_v60  ;;  %v1332_v32 = vor.u32 1.1754944e-38, %v1331_v55  ;;  %v613_v46 = vpop.f32.mrf.mxu3 }
 0x1c2   :  { %v1248_v50 = vmul.f32 %v2144_v48, %v1247_v56  ;;  %v1321_v0 = vmul.f32 %v2152_v63, %v3232_v31  ;;  %2159 = vrcp.f32 %v3249_v57  ;;  %vm1340_vm13 = vweird.f32 %v3238_v10 }
 0x1c3   :  { %2161 = vrcp.f32 %v3251_v18  ;;  %vm1326_vm1 = vweird.f32 %v2152_v63  ;;  %v1314_v25 = vand.u32 2147483647, %v3249_v57  ;;  %v1316_v58 = vand.u32 2147483648, %v3249_v57 }
 0x1c4   :  { %v1249_v34 = vadd.f32 %v2144_v48, %v1248_v50  ;;  %v1322_v13 = vsub.f32 1.0, %v1321_v0  ;;  %2163 = vrcp.f32 %v3254_v51  ;;  %vm3279_vm15 = vcmp.eq.f32.partialorder %v1344_v4, 8.507059e+37  ;;  %vm1327_vm4 = vmor %vm1325_vm11, %vm1326_vm1  ;;  %v736_v0 = vpop.f32.mrf.mxu2 }
 0x1c5   :  { %v2154_v23 = vpop.eup %2153  ;;  %v1359_v17 = vand.u32 2147483647, %v3251_v18  ;;  %v1347_v21 = vor.u32 1.1754944e-38, %v1346_v5  ;;  %v1361_v22 = vand.u32 2147483648, %v3251_v18  ;;  %v895_v24 = vsub.f32 0.0, %v3266_v7 }
 0x1c6   :  { %v2156_v59 = vpop.eup %2155  ;;  %v1253_v14 = vsel %vm1252_vm14, %v2144_v48, %v1249_v34  ;;  %v1323_v15 = vmul.f32 %v2152_v63, %v1322_v13  ;;  %v1336_v6 = vmul.f32 %v2154_v23, %v3238_v10  ;;  %vm1310_vm2 = vweird.f32 %v3249_v57 }
 0x1c7   :  { %v2158_v19 = vpop.eup %2157  ;;  %v1258_v20 = vsel %vm3243_vm9, %v1257_v53, %v1253_v14  ;;  %vm1355_vm3 = vweird.f32 %v3251_v18  ;;  %vm1341_vm5 = vweird.f32 %v2154_v23  ;;  %vm3294_vm6 = vcmp.eq.f32.partialorder %v1314_v25, 8.507059e+37  ;;  %v657_v14 = vpop.f32.mrf.mxu0 }
 0x1c8   :  { %v2160_v26 = vpop.eup %2159  ;;  %1945 = vst [vmem:[#allocation2 + $0x50] sm:$0xff] %v1258_v20  ;;  %v1324_v40 = vadd.f32 %v2152_v63, %v1323_v15  ;;  %v1337_v1 = vsub.f32 1.0, %v1336_v6  ;;  %v1317_v29 = vor.u32 1.1754944e-38, %v1316_v58  ;;  %v3298_v30 = vadd.f32 1.0, %v2156_v59  ;;  %vm1342_vm8 = vmor %vm1340_vm13, %vm1341_vm5  ;;  %v698_v20 = vpop.f32.mrf.mxu1 }
 0x1c9   :  { %v2162_v11 = vpop.eup %2161  ;;  %v1306_v27 = vmul.f32 %v2160_v26, %v3249_v57  ;;  %vm3301_vm7 = vcmp.eq.f32.partialorder %v1359_v17, 8.507059e+37  ;;  %v1362_v42 = vor.u32 1.1754944e-38, %v1361_v22  ;;  %v3307_v44 = vadd.f32 1.0, %v2158_v19 }
 0x1ca   :  { %v1328_v33 = vsel %vm1327_vm4, %v2152_v63, %v1324_v40  ;;  %v1338_v36 = vmul.f32 %v2154_v23, %v1337_v1  ;;  %v1351_v35 = vmul.f32 %v2162_v11, %v3251_v18  ;;  %v2164_v31 = vpop.eup %2163  ;;  %v1434_v2 = vand.u32 2147483647, %v3254_v51 }
 0x1cb   :  { %v1333_v38 = vsel %vm3257_vm12, %v1332_v32, %v1328_v33  ;;  %v1307_v41 = vsub.f32 1.0, %v1306_v27  ;;  %v1426_v47 = vmul.f32 %v2164_v31, %v3254_v51  ;;  %vm1311_vm9 = vweird.f32 %v2160_v26  ;;  %v616_v33 = vpop.f32.mrf.mxu3 }
 0x1cc   :  { %1950 = vst [vmem:[#allocation2 + $0x78] sm:$0xff] %v1333_v38  ;;  %v1339_v48 = vadd.f32 %v2154_v23, %v1338_v36  ;;  %v1352_v45 = vsub.f32 1.0, %v1351_v35  ;;  %v1436_v52 = vand.u32 2147483648, %v3254_v51  ;;  %2165 = vrcp.f32 %v3298_v30  ;;  %vm1312_vm12 = vmor %vm1310_vm2, %vm1311_vm9 }
 0x1cd   :  { %v1308_v49 = vmul.f32 %v2160_v26, %v1307_v41  ;;  %vm1356_vm10 = vweird.f32 %v2162_v11  ;;  %v1427_v55 = vsub.f32 1.0, %v1426_v47  ;;  %vm1431_vm11 = vweird.f32 %v2164_v31 }
 0x1ce   :  { %v1343_v54 = vsel %vm1342_vm8, %v2154_v23, %v1339_v48  ;;  %v1353_v53 = vmul.f32 %v2162_v11, %v1352_v45  ;;  %2167 = vrcp.f32 %v3307_v44  ;;  %v1449_v63 = vand.u32 2147483647, %v3298_v30  ;;  %vm1357_vm13 = vmor %vm1355_vm3, %vm1356_vm10  ;;  %v739_v48 = vpop.f32.mrf.mxu2 }
 0x1cf   :  { %v1348_v56 = vsel %vm3279_vm15, %v1347_v21, %v1343_v54  ;;  %v1309_v61 = vadd.f32 %v2160_v26, %v1308_v49  ;;  %v1428_v62 = vmul.f32 %v2164_v31, %v1427_v55  ;;  %v1451_v50 = vand.u32 2147483648, %v3298_v30 }
 0x1d0   :  { %1951 = vst [vmem:[#allocation2 + $0x80] sm:$0xff] %v1348_v56  ;;  %v1354_v10 = vadd.f32 %v2162_v11, %v1353_v53  ;;  %vm1430_vm14 = vweird.f32 %v3254_v51  ;;  %vm3327_vm1 = vcmp.eq.f32.partialorder %v1434_v2, 8.507059e+37  ;;  %v975_v57 = vmul.f32 1.442695, %v895_v24 }
 0x1d1   :  { %v1313_v43 = vsel %vm1312_vm12, %v2160_v26, %v1309_v61  ;;  %v1429_v34 = vadd.f32 %v2164_v31, %v1428_v62  ;;  %v900_v13 = vsub.f32 0.0, %v3269_v8  ;;  %vm1432_vm15 = vmor %vm1430_vm14, %vm1431_vm11  ;;  %v1437_v51 = vor.u32 1.1754944e-38, %v1436_v52  ;;  %v660_v61 = vpop.f32.mrf.mxu0 }
 0x1d2   :  { %v1318_v5 = vsel %vm3294_vm6, %v1317_v29, %v1313_v43  ;;  %v1358_v7 = vsel %vm1357_vm13, %v2162_v11, %v1354_v10  ;;  %v2166_v32 = vpop.eup %2165  ;;  %vm1445_vm2 = vweird.f32 %v3298_v30  ;;  %2169 = vpow2.f32 %v975_v57 }
 0x1d3   :  { %1949 = vst [vmem:[#allocation2 + $0x70] sm:$0xff] %v1318_v5  ;;  %v1363_v18 = vsel %vm3301_vm7, %v1362_v42, %v1358_v7  ;;  %v1433_v23 = vsel %vm1432_vm15, %v2164_v31, %v1429_v34  ;;  %v1441_v25 = vmul.f32 %v2166_v32, %v3298_v30  ;;  %vm3339_vm3 = vcmp.eq.f32.partialorder %v1449_v63, 8.507059e+37 }
 0x1d4   :  { %1952 = vst [vmem:[#allocation2 + $0x88] sm:$0xff] %v1363_v18  ;;  %v1452_v8 = vor.u32 1.1754944e-38, %v1451_v50  ;;  %v985_v59 = vmul.f32 1.442695, %v900_v13  ;;  %v2168_v15 = vpop.eup %2167  ;;  %v1438_v6 = vsel %vm3327_vm1, %v1437_v51, %v1433_v23  ;;  %v696_v16 = vadd.f32 %v695_v39, %v3099_v3 }
 0x1d5   :  { %v614_v17 = vadd.f32 %v613_v46, %v3103_v9  ;;  %v737_v19 = vadd.f32 %v736_v0, %v3105_v12  ;;  %1957 = vst [vmem:[#allocation2 + $0xb0] sm:$0xff] %v1438_v6  ;;  %v1442_v21 = vsub.f32 1.0, %v1441_v25  ;;  %v1411_v22 = vmul.f32 %v2168_v15, %v3307_v44 }
 0x1d6   :  { %v1419_v24 = vand.u32 2147483647, %v3307_v44  ;;  %2171 = vpow2.f32 %v985_v59  ;;  %vm1446_vm4 = vweird.f32 %v2166_v32  ;;  %v901_v26 = vsub.f32 0.0, %v696_v16 }
 0x1d7   :  { %v899_v40 = vsub.f32 0.0, %v614_v17  ;;  %v658_v1 = vadd.f32 %v657_v14, %v3097_v60  ;;  %v1443_v11 = vmul.f32 %v2166_v32, %v1442_v21  ;;  %v1412_v27 = vsub.f32 1.0, %v1411_v22  ;;  %vm1447_vm6 = vmor %vm1445_vm2, %vm1446_vm4 }
 0x1d8   :  { %v902_v28 = vsub.f32 0.0, %v737_v19  ;;  %v699_v29 = vadd.f32 %v698_v20, %v3099_v3  ;;  %v2170_v36 = vpop.eup %2169  ;;  %vm1416_vm5 = vweird.f32 %v2168_v15  ;;  %v1421_v35 = vand.u32 2147483648, %v3307_v44 }
 0x1d9   :  { %v987_v37 = vmul.f32 1.442695, %v901_v26  ;;  %v983_v31 = vmul.f32 1.442695, %v899_v40  ;;  %v1444_v38 = vadd.f32 %v2166_v32, %v1443_v11  ;;  %v1413_v41 = vmul.f32 %v2168_v15, %v1412_v27 }
 0x1da   :  { %v3353_v42 = vadd.f32 1.0, %v2170_v36  ;;  %v907_v39 = vsub.f32 0.0, %v658_v1  ;;  %vm1415_vm7 = vweird.f32 %v3307_v44  ;;  %v908_v45 = vsub.f32 0.0, %v699_v29 }
 0x1db   :  { %2173 = vpow2.f32 %v987_v37  ;;  %v617_v47 = vadd.f32 %v616_v33, %v3103_v9  ;;  %v1448_v49 = vsel %vm1447_vm6, %v2166_v32, %v1444_v38  ;;  %v1414_v52 = vadd.f32 %v2168_v15, %v1413_v41  ;;  %vm1417_vm8 = vmor %vm1415_vm7, %vm1416_vm5 }
 0x1dc   :  { %v2172_v2 = vpop.eup %2171  ;;  %2175 = vrcp.f32 %v3353_v42  ;;  %v989_v54 = vmul.f32 1.442695, %v902_v28  ;;  %v1453_v53 = vsel %vm3339_vm3, %v1452_v8, %v1448_v49  ;;  %v1422_v55 = vor.u32 1.1754944e-38, %v1421_v35 }
 0x1dd   :  { %v3364_v30 = vadd.f32 1.0, %v2172_v2  ;;  %v740_v44 = vadd.f32 %v739_v48, %v3105_v12  ;;  %1958 = vst [vmem:[#allocation2 + $0xb8] sm:$0xff] %v1453_v53  ;;  %v1418_v46 = vsel %vm1417_vm8, %v2168_v15, %v1414_v52  ;;  %vm1420_vm9 = vcmp.eq.f32.partialorder %v1419_v24, 8.507059e+37 }
 0x1de   :  { %2177 = vpow2.f32 %v983_v31  ;;  %v999_v56 = vmul.f32 1.442695, %v907_v39  ;;  %v1423_v10 = vsel %vm1420_vm9, %v1422_v55, %v1418_v46  ;;  %v1464_v62 = vand.u32 2147483647, %v3353_v42  ;;  %v742_v31 = vpop.f32.mrf.mxu2 }
 0x1df   :  { %2179 = vrcp.f32 %v3364_v30  ;;  %v1001_v63 = vmul.f32 1.442695, %v908_v45  ;;  %1956 = vst [vmem:[#allocation2 + $0xa8] sm:$0xff] %v1423_v10  ;;  %v1466_v50 = vand.u32 2147483648, %v3353_v42  ;;  %v906_v0 = vsub.f32 0.0, %v617_v47 }
 0x1e0   :  { %2181 = vpow2.f32 %v989_v54  ;;  %v909_v4 = vsub.f32 0.0, %v740_v44  ;;  %v661_v57 = vadd.f32 %v660_v61, %v3097_v60  ;;  %v1539_v7 = vand.u32 2147483647, %v3364_v30 }
 0x1e1   :  { %v2174_v43 = vpop.eup %2173  ;;  %2183 = vpow2.f32 %v999_v56  ;;  %v1541_v34 = vand.u32 2147483648, %v3364_v30  ;;  %vm1460_vm10 = vweird.f32 %v3353_v42  ;;  %vm3377_vm11 = vcmp.eq.f32.partialorder %v1464_v62, 8.507059e+37 }
 0x1e2   :  { %v2176_v5 = vpop.eup %2175  ;;  %v3373_v13 = vadd.f32 1.0, %v2174_v43  ;;  %2185 = vpow2.f32 %v1001_v63  ;;  %v1467_v23 = vor.u32 1.1754944e-38, %v1466_v50  ;;  %vm1535_vm12 = vweird.f32 %v3364_v30 }
 0x1e3   :  { %v1456_v32 = vmul.f32 %v2176_v5, %v3353_v42  ;;  %v997_v25 = vmul.f32 1.442695, %v906_v0  ;;  %v1003_v14 = vmul.f32 1.442695, %v909_v4  ;;  %v914_v15 = vsub.f32 0.0, %v661_v57  ;;  %v3436_v4 = vpop.f32.mrf.mxu1 }
 0x1e4   :  { %v2178_v51 = vpop.eup %2177  ;;  %2187 = vrcp.f32 %v3373_v13  ;;  %vm1461_vm13 = vweird.f32 %v2176_v5  ;;  %vm3386_vm14 = vcmp.eq.f32.partialorder %v1539_v7, 8.507059e+37  ;;  %v1542_v19 = vor.u32 1.1754944e-38, %v1541_v34 }
 0x1e5   :  { %v2180_v58 = vpop.eup %2179  ;;  %v1457_v8 = vsub.f32 1.0, %v1456_v32  ;;  %v3383_v59 = vadd.f32 1.0, %v2178_v51  ;;  %v1554_v22 = vand.u32 2147483647, %v3373_v13  ;;  %v1556_v24 = vand.u32 2147483648, %v3373_v13  ;;  %vm1462_vm15 = vmor %vm1460_vm10, %vm1461_vm13 }
 0x1e6   :  { %v2182_v6 = vpop.eup %2181  ;;  %v1531_v16 = vmul.f32 %v2180_v58, %v3364_v30  ;;  %vm1550_vm1 = vweird.f32 %v3373_v13  ;;  %v1013_v28 = vmul.f32 1.442695, %v914_v15  ;;  %vm1536_vm2 = vweird.f32 %v2180_v58 }
 0x1e7   :  { %v2184_v20 = vpop.eup %2183  ;;  %v1458_v21 = vmul.f32 %v2176_v5, %v1457_v8  ;;  %2189 = vrcp.f32 %v3383_v59  ;;  %v3393_v40 = vadd.f32 1.0, %v2182_v6  ;;  %v1524_v36 = vand.u32 2147483647, %v3383_v59  ;;  %vm1537_vm4 = vmor %vm1535_vm12, %vm1536_vm2 }
 0x1e8   :  { %v1532_v26 = vsub.f32 1.0, %v1531_v16  ;;  %v3395_v1 = vadd.f32 1.0, %v2184_v20  ;;  %2191 = vpow2.f32 %v997_v25  ;;  %v2186_v11 = vpop.eup %2185  ;;  %vm3404_vm3 = vcmp.eq.f32.partialorder %v1554_v22, 8.507059e+37 }
 0x1e9   :  { %v1459_v27 = vadd.f32 %v2176_v5, %v1458_v21  ;;  %2193 = vpow2.f32 %v1003_v14  ;;  %v1557_v38 = vor.u32 1.1754944e-38, %v1556_v24  ;;  %v1526_v41 = vand.u32 2147483648, %v3383_v59 }
 0x1ea   :  { %v2188_v29 = vpop.eup %2187  ;;  %v1533_v33 = vmul.f32 %v2180_v58, %v1532_v26  ;;  %2195 = vrcp.f32 %v3393_v40  ;;  %v3412_v48 = vadd.f32 1.0, %v2186_v11  ;;  %vm1520_vm5 = vweird.f32 %v3383_v59 }
 0x1eb   :  { %v1463_v35 = vsel %vm1462_vm15, %v2176_v5, %v1459_v27  ;;  %v1546_v37 = vmul.f32 %v2188_v29, %v3373_v13  ;;  %2197 = vrcp.f32 %v3395_v1  ;;  %v1569_v2 = vand.u32 2147483647, %v3393_v40 }
 0x1ec   :  { %v1468_v42 = vsel %vm3377_vm11, %v1467_v23, %v1463_v35  ;;  %v1534_v39 = vadd.f32 %v2180_v58, %v1533_v33  ;;  %2199 = vpow2.f32 %v1013_v28  ;;  %vm3419_vm6 = vcmp.eq.f32.partialorder %v1524_v36, 8.507059e+37 }
 0x1ed   :  { %v2190_v45 = vpop.eup %2189  ;;  %1959 = vst [vmem:[#allocation2 + $0xc0] sm:$0xff] %v1468_v42  ;;  %v1547_v47 = vsub.f32 1.0, %v1546_v37  ;;  %v1571_v55 = vand.u32 2147483648, %v3393_v40  ;;  %vm1551_vm7 = vweird.f32 %v2188_v29  ;;  %v1644_v56 = vand.u32 2147483647, %v3395_v1  ;;  %v619_v37 = vpop.f32.mrf.mxu3 }
 0x1ee   :  { %v2192_v49 = vpop.eup %2191  ;;  %v1538_v52 = vsel %vm1537_vm4, %v2180_v58, %v1534_v39  ;;  %v1516_v54 = vmul.f32 %v2190_v45, %v3383_v59  ;;  %v1527_v62 = vor.u32 1.1754944e-38, %v1526_v41  ;;  %vm1565_vm8 = vweird.f32 %v3393_v40  ;;  %vm1552_vm11 = vmor %vm1550_vm1, %vm1551_vm7  ;;  %v663_v42 = vpop.f32.mrf.mxu0 }
 0x1ef   :  { %v2194_v44 = vpop.eup %2193  ;;  %v1543_v30 = vsel %vm3386_vm14, %v1542_v19, %v1538_v52  ;;  %v1548_v46 = vmul.f32 %v2188_v29, %v1547_v47  ;;  %2201 = vrcp.f32 %v3412_v48  ;;  %vm3430_vm9 = vcmp.eq.f32.partialorder %v1569_v2, 8.507059e+37 }
 0x1f0   :  { %v2196_v61 = vpop.eup %2195  ;;  %1964 = vst [vmem:[#allocation2 + $0xe8] sm:$0xff] %v1543_v30  ;;  %v1517_v10 = vsub.f32 1.0, %v1516_v54  ;;  %vm1640_vm10 = vweird.f32 %v3395_v1  ;;  %v1646_v43 = vand.u32 2147483648, %v3395_v1  ;;  %vm1521_vm12 = vweird.f32 %v2190_v45 }
 0x1f1   :  { %v1549_v63 = vadd.f32 %v2188_v29, %v1548_v46  ;;  %v1561_v50 = vmul.f32 %v2196_v61, %v3393_v40  ;;  %v2198_v57 = vpop.eup %2197  ;;  %v1572_v7 = vor.u32 1.1754944e-38, %v1571_v55  ;;  %v3441_v34 = vadd.f32 1.0, %v2192_v49  ;;  %vm1522_vm14 = vmor %vm1520_vm5, %vm1521_vm12  ;;  %v704_v49 = vpop.f32.mrf.mxu1 }
 0x1f2   :  { %v1518_v5 = vmul.f32 %v2190_v45, %v1517_v10  ;;  %v2200_v32 = vpop.eup %2199  ;;  %v1636_v23 = vmul.f32 %v2198_v57, %v3395_v1  ;;  %vm3444_vm13 = vcmp.eq.f32.partialorder %v1644_v56, 8.507059e+37  ;;  %v1659_v58 = vand.u32 2147483647, %v3412_v48 }
 0x1f3   :  { %v1553_v18 = vsel %vm1552_vm11, %v2188_v29, %v1549_v63  ;;  %v1562_v51 = vsub.f32 1.0, %v1561_v50  ;;  %v1661_v14 = vand.u32 2147483648, %v3412_v48  ;;  %2203 = vrcp.f32 %v3441_v34 }
 0x1f4   :  { %v1558_v13 = vsel %vm3404_vm3, %v1557_v38, %v1553_v18  ;;  %v1519_v8 = vadd.f32 %v2190_v45, %v1518_v5  ;;  %vm1566_vm1 = vweird.f32 %v2196_v61  ;;  %v1637_v6 = vsub.f32 1.0, %v1636_v23 }
 0x1f5   :  { %1965 = vst [vmem:[#allocation2 + $0xf0] sm:$0xff] %v1558_v13  ;;  %v1563_v15 = vmul.f32 %v2196_v61, %v1562_v51  ;;  %v1647_v16 = vor.u32 1.1754944e-38, %v1646_v43  ;;  %vm1655_vm15 = vweird.f32 %v3412_v48  ;;  %v2202_v17 = vpop.eup %2201  ;;  %vm1641_vm2 = vweird.f32 %v2198_v57  ;;  %vm1567_vm4 = vmor %vm1565_vm8, %vm1566_vm1 }
 0x1f6   :  { %v1523_v19 = vsel %vm1522_vm14, %v2190_v45, %v1519_v8  ;;  %v3456_v20 = vadd.f32 1.0, %v2194_v44  ;;  %v3458_v21 = vadd.f32 1.0, %v2200_v32  ;;  %v1638_v26 = vmul.f32 %v2198_v57, %v1637_v6  ;;  %v622_v6 = vpop.f32.mrf.mxu3 }
 0x1f7   :  { %v1528_v22 = vsel %vm3419_vm6, %v1527_v62, %v1523_v19  ;;  %v1564_v24 = vadd.f32 %v2196_v61, %v1563_v15  ;;  %v1651_v59 = vmul.f32 %v2202_v17, %v3412_v48  ;;  %vm3463_vm3 = vcmp.eq.f32.partialorder %v1659_v58, 8.507059e+37  ;;  %vm1642_vm6 = vmor %vm1640_vm10, %vm1641_vm2 }
 0x1f8   :  { %1963 = vst [vmem:[#allocation2 + $0xe0] sm:$0xff] %v1528_v22  ;;  %v1662_v27 = vor.u32 1.1754944e-38, %v1661_v14  ;;  %v1629_v28 = vand.u32 2147483647, %v3441_v34  ;;  %v1631_v29 = vand.u32 2147483648, %v3441_v34  ;;  %2205 = vrcp.f32 %v3456_v20 }
 0x1f9   :  { %v1568_v33 = vsel %vm1567_vm4, %v2196_v61, %v1564_v24  ;;  %v1639_v36 = vadd.f32 %v2198_v57, %v1638_v26  ;;  %v1652_v35 = vsub.f32 1.0, %v1651_v59  ;;  %vm1625_vm5 = vweird.f32 %v3441_v34  ;;  %v2204_v38 = vpop.eup %2203  ;;  %v806_v24 = vpop.f32.mrf.mxu0 }
 0x1fa   :  { %v1573_v41 = vsel %vm3430_vm9, %v1572_v7, %v1568_v33  ;;  %vm1656_vm7 = vweird.f32 %v2202_v17  ;;  %v1676_v40 = vand.u32 2147483648, %v3456_v20  ;;  %2207 = vrcp.f32 %v3458_v21 }
 0x1fb   :  { %1966 = vst [vmem:[#allocation2 + $0xf8] sm:$0xff] %v1573_v41  ;;  %v1643_v39 = vsel %vm1642_vm6, %v2198_v57, %v1639_v36  ;;  %v1653_v45 = vmul.f32 %v2202_v17, %v1652_v35  ;;  %v1621_v47 = vmul.f32 %v2204_v38, %v3441_v34  ;;  %v1674_v2 = vand.u32 2147483647, %v3456_v20  ;;  %vm1657_vm11 = vmor %vm1655_vm15, %vm1656_vm7 }
 0x1fc   :  { %v1648_v52 = vsel %vm3444_vm13, %v1647_v16, %v1643_v39  ;;  %vm1626_vm8 = vweird.f32 %v2204_v38  ;;  %vm3485_vm9 = vcmp.eq.f32.partialorder %v1629_v28, 8.507059e+37  ;;  %v1632_v54 = vor.u32 1.1754944e-38, %v1631_v29  ;;  %v745_v16 = vpop.f32.mrf.mxu2  ;;  %v2333_v29 = vld [vmem:[%s4022_s4] sm:$0x7f]  ;;  %s2360_s4 = smov [#allocation2]  }
 0x1fd   :  { %1971 = vst [vmem:[#allocation2 + $0x120] sm:$0xff] %v1648_v52  ;;  %v1654_v53 = vadd.f32 %v2202_v17, %v1653_v45  ;;  %v1622_v55 = vsub.f32 1.0, %v1621_v47  ;;  %vm1670_vm10 = vweird.f32 %v3456_v20  ;;  %v1677_v44 = vor.u32 1.1754944e-38, %v1676_v40  ;;  %vm1627_vm15 = vmor %vm1625_vm5, %vm1626_vm8  ;;  %s1995_s29 = sshll.u32 %s2360_s4, 4  ;;  %s1996_s29 = int_to_ptr.vmem [resolvable:$true] %s1995_s29 }
 0x1fe   :  { %v1751_v30 = vand.u32 2147483648, %v3458_v21  ;;  %v2206_v46 = vpop.eup %2205  ;;  %v702_v56 = vadd.f32 %v3436_v4, %v3099_v3  ;;  %v620_v61 = vadd.f32 %v619_v37, %v3103_v9  ;;  %v743_v10 = vadd.f32 %v742_v31, %v3105_v12 }
 0x1ff   :  { %v664_v62 = vadd.f32 %v663_v42, %v3097_v60  ;;  %v1658_v63 = vsel %vm1657_vm11, %v2202_v17, %v1654_v53  ;;  %v1623_v50 = vmul.f32 %v2204_v38, %v1622_v55  ;;  %v1666_v0 = vmul.f32 %v2206_v46, %v3456_v20  ;;  %v765_v55 = vpop.f32.mrf.mxu3 }
 0x200   :  { %vm3500_vm12 = vcmp.eq.f32.partialorder %v1674_v2, 8.507059e+37  ;;  %vm1745_vm13 = vweird.f32 %v3458_v21  ;;  %v1749_v48 = vand.u32 2147483647, %v3458_v21  ;;  %v2208_v57 = vpop.eup %2207  ;;  %v1663_v4 = vsel %vm3463_vm3, %v1662_v27, %v1658_v63  ;;  %v847_v27 = vpop.f32.mrf.mxu1 }
 0x201   :  { %vm1671_vm14 = vweird.f32 %v2206_v46  ;;  %v1752_v5 = vor.u32 1.1754944e-38, %v1751_v30  ;;  %v915_v7 = vsub.f32 0.0, %v702_v56  ;;  %1972 = vst [vmem:[#allocation2 + $0x128] sm:$0xff] %v1663_v4  ;;  %v1624_v60 = vadd.f32 %v2204_v38, %v1623_v50 }
 0x202   :  { %v1667_v32 = vsub.f32 1.0, %v1666_v0  ;;  %v1741_v18 = vmul.f32 %v2208_v57, %v3458_v21  ;;  %vm1746_vm1 = vweird.f32 %v2208_v57  ;;  %v913_v23 = vsub.f32 0.0, %v620_v61  ;;  %vm1672_vm2 = vmor %vm1670_vm10, %vm1671_vm14 }
 0x203   :  { %v1015_v51 = vmul.f32 1.442695, %v915_v7  ;;  %v916_v25 = vsub.f32 0.0, %v743_v10  ;;  %v921_v58 = vsub.f32 0.0, %v664_v62  ;;  %v1628_v13 = vsel %vm1627_vm15, %v2204_v38, %v1624_v60  ;;  %vm1747_vm3 = vmor %vm1745_vm13, %vm1746_vm1 }
 0x204   :  { %v1668_v8 = vmul.f32 %v2206_v46, %v1667_v32  ;;  %v1742_v14 = vsub.f32 1.0, %v1741_v18  ;;  %v705_v15 = vadd.f32 %v704_v49, %v3099_v3  ;;  %v1633_v17 = vsel %vm3485_vm9, %v1632_v54, %v1628_v13 }
 0x205   :  { %2209 = vpow2.f32 %v1015_v51  ;;  %v1011_v19 = vmul.f32 1.442695, %v913_v23  ;;  %v1017_v22 = vmul.f32 1.442695, %v916_v25  ;;  %1970 = vst [vmem:[#allocation2 + $0x118] sm:$0xff] %v1633_v17  ;;  %v623_v3 = vadd.f32 %v622_v6, %v3103_v9 }
 0x206   :  { %v1669_v34 = vadd.f32 %v2206_v46, %v1668_v8  ;;  %v1743_v26 = vmul.f32 %v2208_v57, %v1742_v14  ;;  %v1027_v59 = vmul.f32 1.442695, %v921_v58  ;;  %v922_v11 = vsub.f32 0.0, %v705_v15 }
 0x207   :  { %2211 = vpow2.f32 %v1011_v19  ;;  %v746_v28 = vadd.f32 %v745_v16, %v3105_v12  ;;  %v3523_v33 = vperm.slane %v2333_v29, 5  ;;  %v920_v9 = vsub.f32 0.0, %v623_v3 }
 0x208   :  { %v1673_v36 = vsel %vm1672_vm2, %v2206_v46, %v1669_v34  ;;  %v1744_v35 = vadd.f32 %v2208_v57, %v1743_v26  ;;  %2213 = vpow2.f32 %v1017_v22  ;;  %v1029_v37 = vmul.f32 1.442695, %v922_v11  ;;  %v850_v56 = vpop.f32.mrf.mxu1 }
 0x209   :  { %v1678_v31 = vsel %vm3500_vm12, %v1677_v44, %v1673_v36  ;;  %2215 = vpow2.f32 %v1027_v59  ;;  %v923_v12 = vsub.f32 0.0, %v746_v28  ;;  %vm1750_vm4 = vcmp.eq.f32.partialorder %v1749_v48, 8.507059e+37  ;;  %v809_v44 = vpop.f32.mrf.mxu0 }
 0x20a   :  { %1973 = vst [vmem:[#allocation2 + $0x130] sm:$0xff] %v1678_v31  ;;  %v1748_v20 = vsel %vm1747_vm3, %v2208_v57, %v1744_v35  ;;  %v1025_v40 = vmul.f32 1.442695, %v920_v9  ;;  %v807_v39 = vadd.f32 %v806_v24, %v3523_v33  ;;  %2217 = vpow2.f32 %v1029_v37 }
 0x20b   :  { %v2210_v38 = vpop.eup %2209  ;;  %v1753_v41 = vsel %vm1750_vm4, %v1752_v5, %v1748_v20  ;;  %v1031_v42 = vmul.f32 1.442695, %v923_v12  ;;  %v3534_v2 = vperm.slane %v2333_v29, 6  ;;  %v3536_v49 = vperm.slane %v2333_v29, 4 }
 0x20c   :  { %1978 = vst [vmem:[#allocation2 + $0x158] sm:$0xff] %v1753_v41  ;;  %v3531_v45 = vadd.f32 1.0, %v2210_v38  ;;  %2219 = vpow2.f32 %v1025_v40  ;;  %v876_v53 = vsub.f32 0.0, %v807_v39  ;;  %v3555_v50 = vadd.f32 %v809_v44, %v3523_v33 }
 0x20d   :  { %v2212_v47 = vpop.eup %2211  ;;  %v3549_v62 = vadd.f32 %v847_v27, %v3534_v2  ;;  %v3552_v63 = vadd.f32 %v765_v55, %v3536_v49  ;;  %v3560_v57 = vadd.f32 %v850_v56, %v3534_v2 }
 0x20e   :  { %v2214_v21 = vpop.eup %2213  ;;  %2221 = vrcp.f32 %v3531_v45  ;;  %v3538_v1 = vadd.f32 1.0, %v2212_v47  ;;  %v1766_v30 = vand.u32 2147483648, %v3531_v45  ;;  %v1764_v61 = vand.u32 2147483647, %v3531_v45 }
 0x20f   :  { %v2216_v52 = vpop.eup %2215  ;;  %v3540_v54 = vadd.f32 1.0, %v2214_v21  ;;  %2223 = vpow2.f32 %v1031_v42  ;;  %v937_v48 = vmul.f32 1.442695, %v876_v53  ;;  %vm1760_vm5 = vweird.f32 %v3531_v45 }
 0x210   :  { %v3543_v46 = vadd.f32 1.0, %v2216_v52  ;;  %2225 = vrcp.f32 %v3538_v1  ;;  %v2218_v10 = vpop.eup %2217  ;;  %v1736_v43 = vand.u32 2147483648, %v3538_v1  ;;  %v1767_v5 = vor.u32 1.1754944e-38, %v1766_v30  ;;  %v768_v30 = vpop.f32.mrf.mxu3 }
 0x211   :  { %2227 = vrcp.f32 %v3540_v54  ;;  %v1734_v7 = vand.u32 2147483647, %v3538_v1  ;;  %v1779_v60 = vand.u32 2147483647, %v3540_v54  ;;  %vm3566_vm6 = vcmp.eq.f32.partialorder %v1764_v61, 8.507059e+37  ;;  %v812_v56 = vpop.f32.mrf.mxu0 }
 0x212   :  { %v2220_v0 = vpop.eup %2219  ;;  %2229 = vrcp.f32 %v3543_v46  ;;  %v1781_v23 = vand.u32 2147483648, %v3540_v54  ;;  %v3571_v25 = vadd.f32 1.0, %v2218_v10  ;;  %vm1730_vm7 = vweird.f32 %v3538_v1 }
 0x213   :  { %v3573_v58 = vadd.f32 1.0, %v2220_v0  ;;  %v1854_v13 = vand.u32 2147483647, %v3543_v46  ;;  %v1856_v8 = vand.u32 2147483648, %v3543_v46  ;;  %v877_v14 = vsub.f32 0.0, %v3549_v62 }
 0x214   :  { %v2222_v4 = vpop.eup %2221  ;;  %v1737_v16 = vor.u32 1.1754944e-38, %v1736_v43  ;;  %vm1775_vm8 = vweird.f32 %v3540_v54  ;;  %2231 = vrcp.f32 %v3571_v25  ;;  %vm3582_vm9 = vcmp.eq.f32.partialorder %v1734_v7, 8.507059e+37 }
 0x215   :  { %v2224_v32 = vpop.eup %2223  ;;  %v1756_v18 = vmul.f32 %v2222_v4, %v3531_v45  ;;  %vm1850_vm10 = vweird.f32 %v3543_v46  ;;  %2233 = vrcp.f32 %v3573_v58  ;;  %vm1761_vm11 = vweird.f32 %v2222_v4 }
 0x216   :  { %v2226_v15 = vpop.eup %2225  ;;  %v3588_v24 = vadd.f32 1.0, %v2224_v32  ;;  %vm3591_vm12 = vcmp.eq.f32.partialorder %v1779_v60, 8.507059e+37  ;;  %v1782_v27 = vor.u32 1.1754944e-38, %v1781_v23  ;;  %vm3596_vm13 = vcmp.eq.f32.partialorder %v1854_v13, 8.507059e+37  ;;  %vm1762_vm14 = vmor %vm1760_vm5, %vm1761_vm11 }
 0x217   :  { %v1757_v6 = vsub.f32 1.0, %v1756_v18  ;;  %v2228_v17 = vpop.eup %2227  ;;  %v1726_v19 = vmul.f32 %v2226_v15, %v3538_v1  ;;  %v1857_v36 = vor.u32 1.1754944e-38, %v1856_v8  ;;  %v1869_v35 = vand.u32 2147483647, %v3571_v25 }
 0x218   :  { %v2230_v34 = vpop.eup %2229  ;;  %v1771_v59 = vmul.f32 %v2228_v17, %v3540_v54  ;;  %v1871_v9 = vand.u32 2147483648, %v3571_v25  ;;  %2235 = vpow2.f32 %v937_v48  ;;  %vm1731_vm1 = vweird.f32 %v2226_v15 }
 0x219   :  { %v1758_v26 = vmul.f32 %v2222_v4, %v1757_v6  ;;  %v1727_v3 = vsub.f32 1.0, %v1726_v19  ;;  %v1846_v28 = vmul.f32 %v2230_v34, %v3543_v46  ;;  %vm1865_vm15 = vweird.f32 %v3571_v25  ;;  %vm1732_vm5 = vmor %vm1730_vm7, %vm1731_vm1 }
 0x21a   :  { %v1772_v31 = vsub.f32 1.0, %v1771_v59  ;;  %2237 = vrcp.f32 %v3588_v24  ;;  %v2232_v38 = vpop.eup %2231  ;;  %vm1776_vm2 = vweird.f32 %v2228_v17  ;;  %vm1851_vm3 = vweird.f32 %v2230_v34 }
 0x21b   :  { %v1759_v37 = vadd.f32 %v2222_v4, %v1758_v26  ;;  %v1728_v12 = vmul.f32 %v2226_v15, %v1727_v3  ;;  %v1847_v20 = vsub.f32 1.0, %v1846_v28  ;;  %v2234_v42 = vpop.eup %2233  ;;  %v1861_v45 = vmul.f32 %v2232_v38, %v3571_v25  ;;  %vm1852_vm7 = vmor %vm1850_vm10, %vm1851_vm3  ;;  %v853_v3 = vpop.f32.mrf.mxu1 }
 0x21c   :  { %v1773_v40 = vmul.f32 %v2228_v17, %v1772_v31  ;;  %vm3609_vm4 = vcmp.eq.f32.partialorder %v1869_v35, 8.507059e+37  ;;  %v1872_v55 = vor.u32 1.1754944e-38, %v1871_v9  ;;  %v1831_v44 = vmul.f32 %v2234_v42, %v3573_v58  ;;  %v815_v35 = vpop.f32.mrf.mxu0 }
 0x21d   :  { %v1763_v41 = vsel %vm1762_vm14, %v2222_v4, %v1759_v37  ;;  %v1729_v47 = vadd.f32 %v2226_v15, %v1728_v12  ;;  %v1848_v21 = vmul.f32 %v2230_v34, %v1847_v20  ;;  %vm1835_vm11 = vweird.f32 %v3573_v58 }
 0x21e   :  { %v1768_v39 = vsel %vm3566_vm6, %v1767_v5, %v1763_v41  ;;  %v1774_v53 = vadd.f32 %v2228_v17, %v1773_v40  ;;  %vm1777_vm6 = vmor %vm1775_vm8, %vm1776_vm2  ;;  %v1862_v0 = vsub.f32 1.0, %v1861_v45  ;;  %v1839_v43 = vand.u32 2147483647, %v3573_v58  ;;  %v2236_v48 = vpop.eup %2235 }
 0x21f   :  { %1979 = vst [vmem:[#allocation2 + $0x160] sm:$0xff] %v1768_v39  ;;  %v1733_v61 = vsel %vm1732_vm5, %v2226_v15, %v1729_v47  ;;  %v1849_v10 = vadd.f32 %v2230_v34, %v1848_v21  ;;  %v1832_v5 = vsub.f32 1.0, %v1831_v44  ;;  %v1841_v7 = vand.u32 2147483648, %v3573_v58 }
 0x220   :  { %v1738_v1 = vsel %vm3582_vm9, %v1737_v16, %v1733_v61  ;;  %v1778_v4 = vsel %vm1777_vm6, %v2228_v17, %v1774_v53  ;;  %v2238_v60 = vpop.eup %2237  ;;  %v1863_v18 = vmul.f32 %v2232_v38, %v1862_v0  ;;  %vm1866_vm8 = vweird.f32 %v2232_v38 }
 0x221   :  { %1977 = vst [vmem:[#allocation2 + $0x150] sm:$0xff] %v1738_v1  ;;  %v1783_v54 = vsel %vm3591_vm12, %v1782_v27, %v1778_v4  ;;  %v1853_v32 = vsel %vm1852_vm7, %v2230_v34, %v1849_v10  ;;  %v1833_v23 = vmul.f32 %v2234_v42, %v1832_v5  ;;  %vm1836_vm9 = vweird.f32 %v2234_v42  ;;  %vm1867_vm12 = vmor %vm1865_vm15, %vm1866_vm8 }
 0x222   :  { %1980 = vst [vmem:[#allocation2 + $0x168] sm:$0xff] %v1783_v54  ;;  %v1858_v51 = vsel %vm3596_vm13, %v1857_v36, %v1853_v32  ;;  %v1876_v46 = vmul.f32 %v2238_v60, %v3588_v24  ;;  %v1864_v13 = vadd.f32 %v2232_v38, %v1863_v18  ;;  %vm3633_vm10 = vcmp.eq.f32.partialorder %v1839_v43, 8.507059e+37  ;;  %vm1837_vm13 = vmor %vm1835_vm11, %vm1836_vm9  ;;  %v771_v36 = vpop.f32.mrf.mxu3 }
 0x223   :  { %1985 = vst [vmem:[#allocation2 + $0x190] sm:$0xff] %v1858_v51  ;;  %v1886_v15 = vand.u32 2147483648, %v3588_v24  ;;  %v3638_v6 = vadd.f32 1.0, %v2236_v48  ;;  %v1834_v16 = vadd.f32 %v2234_v42, %v1833_v23  ;;  %v939_v19 = vmul.f32 1.442695, %v877_v14  ;;  %v856_v10 = vpop.f32.mrf.mxu1 }
 0x224   :  { %v1877_v17 = vsub.f32 1.0, %v1876_v46  ;;  %v875_v22 = vsub.f32 0.0, %v3552_v63  ;;  %v1868_v34 = vsel %vm1867_vm12, %v2232_v38, %v1864_v13  ;;  %v1842_v26 = vor.u32 1.1754944e-38, %v1841_v7  ;;  %v818_v54 = vpop.f32.mrf.mxu0 }
 0x225   :  { %v1884_v59 = vand.u32 2147483647, %v3588_v24  ;;  %2239 = vrcp.f32 %v3638_v6  ;;  %v1873_v25 = vsel %vm3609_vm4, %v1872_v55, %v1868_v34  ;;  %v1838_v11 = vsel %vm1837_vm13, %v2234_v42, %v1834_v16 }
 0x226   :  { %v1878_v27 = vmul.f32 %v2238_v60, %v1877_v17  ;;  %vm1881_vm14 = vweird.f32 %v2238_v60  ;;  %1986 = vst [vmem:[#allocation2 + $0x198] sm:$0xff] %v1873_v25  ;;  %v1843_v62 = vsel %vm3633_vm10, %v1842_v26, %v1838_v11  ;;  %vm1880_vm1 = vweird.f32 %v3588_v24 }
 0x227   :  { %2241 = vpow2.f32 %v939_v19  ;;  %v935_v63 = vmul.f32 1.442695, %v875_v22  ;;  %1984 = vst [vmem:[#allocation2 + $0x188] sm:$0xff] %v1843_v62  ;;  %v1887_v14 = vor.u32 1.1754944e-38, %v1886_v15  ;;  %v883_v28 = vsub.f32 0.0, %v3555_v50  ;;  %vm1882_vm15 = vmor %vm1880_vm1, %vm1881_vm14 }
 0x228   :  { %v1879_v58 = vadd.f32 %v2238_v60, %v1878_v27  ;;  %v884_v29 = vsub.f32 0.0, %v3560_v57  ;;  %v769_v37 = vadd.f32 %v768_v30, %v3536_v49  ;;  %v813_v31 = vadd.f32 %v812_v56, %v3523_v33 }
 0x229   :  { %2243 = vpow2.f32 %v935_v63  ;;  %v854_v9 = vadd.f32 %v853_v3, %v3534_v2  ;;  %vm1885_vm2 = vcmp.eq.f32.partialorder %v1884_v59, 8.507059e+37  ;;  %v951_v12 = vmul.f32 1.442695, %v883_v28 }
 0x22a   :  { %v1883_v24 = vsel %vm1882_vm15, %v2238_v60, %v1879_v58  ;;  %v953_v20 = vmul.f32 1.442695, %v884_v29  ;;  %v882_v40 = vsub.f32 0.0, %v769_v37  ;;  %v890_v50 = vsub.f32 0.0, %v813_v31  ;;  %v774_v60 = vpop.f32.mrf.mxu3 }
 0x22b   :  { %v2240_v38 = vpop.eup %2239  ;;  %v1888_v41 = vsel %vm1885_vm2, %v1887_v14, %v1883_v24  ;;  %v772_v57 = vadd.f32 %v771_v36, %v3536_v49  ;;  %2245 = vpow2.f32 %v951_v12  ;;  %v891_v45 = vsub.f32 0.0, %v854_v9 }
 0x22c   :  { %1987 = vst [vmem:[#allocation2 + $0x1a0] sm:$0xff] %v1888_v41  ;;  %v1171_v42 = vmul.f32 %v2240_v38, %v3638_v6  ;;  %2247 = vpow2.f32 %v953_v20  ;;  %v949_v47 = vmul.f32 1.442695, %v882_v40  ;;  %v965_v21 = vmul.f32 1.442695, %v890_v50 }
 0x22d   :  { %v2242_v39 = vpop.eup %2241  ;;  %v1179_v53 = vand.u32 2147483647, %v3638_v6  ;;  %v1181_v55 = vand.u32 2147483648, %v3638_v6  ;;  %v889_v56 = vsub.f32 0.0, %v772_v57  ;;  %vm1176_vm3 = vweird.f32 %v2240_v38 }
 0x22e   :  { %v1172_v52 = vsub.f32 1.0, %v1171_v42  ;;  %v3663_v44 = vadd.f32 1.0, %v2242_v39  ;;  %2249 = vpow2.f32 %v949_v47  ;;  %vm1175_vm4 = vweird.f32 %v3638_v6 }
 0x22f   :  { %v2244_v30 = vpop.eup %2243  ;;  %v967_v43 = vmul.f32 1.442695, %v891_v45  ;;  %vm3669_vm5 = vcmp.eq.f32.partialorder %v1179_v53, 8.507059e+37  ;;  %v1182_v5 = vor.u32 1.1754944e-38, %v1181_v55  ;;  %v816_v7 = vadd.f32 %v815_v35, %v3523_v33  ;;  %vm1177_vm11 = vmor %vm1175_vm4, %vm1176_vm3 }
 0x230   :  { %v1173_v61 = vmul.f32 %v2240_v38, %v1172_v52  ;;  %2251 = vrcp.f32 %v3663_v44  ;;  %v3667_v0 = vadd.f32 1.0, %v2244_v30  ;;  %v1194_v18 = vand.u32 2147483647, %v3663_v44 }
 0x231   :  { %2253 = vpow2.f32 %v965_v21  ;;  %v2246_v48 = vpop.eup %2245  ;;  %v963_v51 = vmul.f32 1.442695, %v889_v56  ;;  %v3678_v23 = vadd.f32 %v856_v10, %v3534_v2  ;;  %v1196_v13 = vand.u32 2147483648, %v3663_v44 }
 0x232   :  { %v1174_v1 = vadd.f32 %v2240_v38, %v1173_v61  ;;  %v2248_v32 = vpop.eup %2247  ;;  %2255 = vrcp.f32 %v3667_v0  ;;  %v3681_v8 = vadd.f32 1.0, %v2246_v48  ;;  %v3688_v17 = vadd.f32 %v774_v60, %v3536_v49 }
 0x233   :  { %v3683_v15 = vadd.f32 1.0, %v2248_v32  ;;  %2257 = vpow2.f32 %v967_v43  ;;  %v3691_v19 = vadd.f32 %v818_v54, %v3523_v33  ;;  %vm1190_vm6 = vweird.f32 %v3663_v44 }
 0x234   :  { %v1178_v46 = vsel %vm1177_vm11, %v2240_v38, %v1174_v1  ;;  %v2250_v6 = vpop.eup %2249  ;;  %v1164_v34 = vand.u32 2147483647, %v3667_v0  ;;  %2259 = vrcp.f32 %v3681_v8  ;;  %v897_v26 = vsub.f32 0.0, %v816_v7 }
 0x235   :  { %v1183_v16 = vsel %vm3669_vm5, %v1182_v5, %v1178_v46  ;;  %vm3697_vm7 = vcmp.eq.f32.partialorder %v1194_v18, 8.507059e+37  ;;  %v1166_v27 = vand.u32 2147483648, %v3667_v0  ;;  %2261 = vrcp.f32 %v3683_v15 }
 0x236   :  { %v2252_v22 = vpop.eup %2251  ;;  %1940 = vst [vmem:[#allocation2 + $0x28] sm:$0xff] %v1183_v16  ;;  %v898_v3 = vsub.f32 0.0, %v3678_v23  ;;  %v1197_v62 = vor.u32 1.1754944e-38, %v1196_v13  ;;  %vm1160_vm8 = vweird.f32 %v3667_v0  ;;  %v1284_v63 = vand.u32 2147483647, %v3681_v8 }
 0x237   :  { %v2254_v59 = vpop.eup %2253  ;;  %v1186_v25 = vmul.f32 %v2252_v22, %v3663_v44  ;;  %2263 = vpow2.f32 %v963_v51  ;;  %v1286_v28 = vand.u32 2147483648, %v3681_v8  ;;  %v3707_v29 = vadd.f32 1.0, %v2250_v6 }
 0x238   :  { %v2256_v58 = vpop.eup %2255  ;;  %v3709_v36 = vadd.f32 1.0, %v2254_v59  ;;  %vm3712_vm9 = vcmp.eq.f32.partialorder %v1164_v34, 8.507059e+37  ;;  %v1299_v31 = vand.u32 2147483647, %v3683_v15  ;;  %v1301_v9 = vand.u32 2147483648, %v3683_v15  ;;  %v859_v34 = vpop.f32.mrf.mxu1 }
 0x239   :  { %v1187_v14 = vsub.f32 1.0, %v1186_v25  ;;  %v1156_v35 = vmul.f32 %v2256_v58, %v3667_v0  ;;  %v3718_v24 = vmul.f32 1.442695, %v897_v26  ;;  %v2258_v12 = vpop.eup %2257  ;;  %vm1191_vm10 = vweird.f32 %v2252_v22 }
 0x23a   :  { %v1167_v38 = vor.u32 1.1754944e-38, %v1166_v27  ;;  %2265 = vrcp.f32 %v3707_v29  ;;  %v2260_v41 = vpop.eup %2259  ;;  %vm1280_vm12 = vweird.f32 %v3681_v8  ;;  %vm1295_vm13 = vweird.f32 %v3683_v15  ;;  %vm1192_vm15 = vmor %vm1190_vm6, %vm1191_vm10 }
 0x23b   :  { %v1188_v20 = vmul.f32 %v2252_v22, %v1187_v14  ;;  %v1157_v40 = vsub.f32 1.0, %v1156_v35  ;;  %2267 = vrcp.f32 %v3709_v36  ;;  %v2262_v50 = vpop.eup %2261  ;;  %vm1161_vm14 = vweird.f32 %v2256_v58 }
 0x23c   :  { %v1276_v42 = vmul.f32 %v2260_v41, %v3681_v8  ;;  %vm3725_vm1 = vcmp.eq.f32.partialorder %v1284_v63, 8.507059e+37  ;;  %v1287_v47 = vor.u32 1.1754944e-38, %v1286_v28  ;;  %v1291_v52 = vmul.f32 %v2262_v50, %v3683_v15  ;;  %vm1162_vm4 = vmor %vm1160_vm8, %vm1161_vm14 }
 0x23d   :  { %v1189_v57 = vadd.f32 %v2252_v22, %v1188_v20  ;;  %v2264_v21 = vpop.eup %2263  ;;  %v1158_v45 = vmul.f32 %v2256_v58, %v1157_v40  ;;  %vm3733_vm2 = vcmp.eq.f32.partialorder %v1299_v31, 8.507059e+37  ;;  %v1302_v55 = vor.u32 1.1754944e-38, %v1301_v9  ;;  %v821_v40 = vpop.f32.mrf.mxu0 }
 0x23e   :  { %v1277_v56 = vsub.f32 1.0, %v1276_v42  ;;  %v1269_v61 = vand.u32 2147483647, %v3707_v29  ;;  %v1271_v10 = vand.u32 2147483648, %v3707_v29  ;;  %v1292_v44 = vsub.f32 1.0, %v1291_v52 }
 0x23f   :  { %v1193_v30 = vsel %vm1192_vm15, %v2252_v22, %v1189_v57  ;;  %v1159_v48 = vadd.f32 %v2256_v58, %v1158_v45  ;;  %vm1265_vm3 = vweird.f32 %v3707_v29  ;;  %v3742_v1 = vadd.f32 1.0, %v2258_v12 }
 0x240   :  { %v1198_v43 = vsel %vm3697_vm7, %v1197_v62, %v1193_v30  ;;  %v2266_v4 = vpop.eup %2265  ;;  %v1278_v5 = vmul.f32 %v2260_v41, %v1277_v56  ;;  %vm1281_vm5 = vweird.f32 %v2260_v41  ;;  %vm1296_vm11 = vweird.f32 %v2262_v50  ;;  %v862_v53 = vpop.f32.mrf.mxu1 }
 0x241   :  { %1941 = vst.msk [vmem:[#allocation2 + $0x30] sm:$0xff] %vm179_vm0, %v1198_v43  ;;  %vm1385_vm6 = vweird.f32 %v3709_v36  ;;  %v2268_v7 = vpop.eup %2267  ;;  %v1163_v60 = vsel %vm1162_vm4, %v2256_v58, %v1159_v48  ;;  %v1293_v54 = vmul.f32 %v2262_v50, %v1292_v44  ;;  %v1261_v32 = vmul.f32 %v2266_v4, %v3707_v29  ;;  %vm1282_vm7 = vmor %vm1280_vm12, %vm1281_vm5 }
 0x242   :  { %v3750_v18 = vadd.f32 1.0, %v2264_v21  ;;  %v1168_v51 = vsel %vm3712_vm9, %v1167_v38, %v1163_v60  ;;  %v1279_v46 = vadd.f32 %v2260_v41, %v1278_v5  ;;  %v1381_v13 = vmul.f32 %v2268_v7, %v3709_v36  ;;  %vm1297_vm8 = vmor %vm1295_vm13, %vm1296_vm11 }
 0x243   :  { %v1389_v0 = vand.u32 2147483647, %v3709_v36  ;;  %1939 = vst [vmem:[#allocation2 + $0x20] sm:$0xff] %v1168_v51  ;;  %v1294_v6 = vadd.f32 %v2262_v50, %v1293_v54  ;;  %v1262_v16 = vsub.f32 1.0, %v1261_v32  ;;  %v1391_v22 = vand.u32 2147483648, %v3709_v36 }
 0x244   :  { %2269 = vrcp.f32 %v3742_v1  ;;  %v1283_v26 = vsel %vm1282_vm7, %v2260_v41, %v1279_v46  ;;  %vm1266_vm9 = vweird.f32 %v2266_v4  ;;  %vm3763_vm10 = vcmp.eq.f32.partialorder %v1269_v61, 8.507059e+37 }
 0x245   :  { %v1382_v25 = vsub.f32 1.0, %v1381_v13  ;;  %v1288_v8 = vsel %vm3725_vm1, %v1287_v47, %v1283_v26  ;;  %v1298_v11 = vsel %vm1297_vm8, %v2262_v50, %v1294_v6  ;;  %v1263_v27 = vmul.f32 %v2266_v4, %v1262_v16  ;;  %vm1267_vm14 = vmor %vm1265_vm3, %vm1266_vm9 }
 0x246   :  { %2271 = vrcp.f32 %v3750_v18  ;;  %1947 = vst [vmem:[#allocation2 + $0x60] sm:$0xff] %v1288_v8  ;;  %v1303_v62 = vsel %vm3733_vm2, %v1302_v55, %v1298_v11  ;;  %vm1386_vm12 = vweird.f32 %v2268_v7  ;;  %v1404_v15 = vand.u32 2147483647, %v3742_v1 }
 0x247   :  { %v1383_v63 = vmul.f32 %v2268_v7, %v1382_v25  ;;  %1948 = vst.msk [vmem:[#allocation2 + $0x68] sm:$0xff] %vm179_vm0, %v1303_v62  ;;  %v1264_v58 = vadd.f32 %v2266_v4, %v1263_v27  ;;  %v1272_v14 = vor.u32 1.1754944e-38, %v1271_v10  ;;  %vm3774_vm13 = vcmp.eq.f32.partialorder %v1389_v0, 8.507059e+37  ;;  %vm1387_vm1 = vmor %vm1385_vm6, %vm1386_vm12 }
 0x248   :  { %v1392_v35 = vor.u32 1.1754944e-38, %v1391_v22  ;;  %2273 = vpow2.f32 %v3718_v24  ;;  %v981_v31 = vmul.f32 1.442695, %v898_v3  ;;  %v896_v9 = vsub.f32 0.0, %v3688_v17  ;;  %v777_v17 = vpop.f32.mrf.mxu3 }
 0x249   :  { %v1384_v37 = vadd.f32 %v2268_v7, %v1383_v63  ;;  %v1268_v20 = vsel %vm1267_vm14, %v2266_v4, %v1264_v58  ;;  %vm1400_vm15 = vweird.f32 %v3742_v1  ;;  %v1406_v38 = vand.u32 2147483648, %v3742_v1 }
 0x24a   :  { %v2270_v12 = vpop.eup %2269  ;;  %v904_v29 = vsub.f32 0.0, %v3691_v19  ;;  %v1273_v41 = vsel %vm3763_vm10, %v1272_v14, %v1268_v20  ;;  %vm3793_vm2 = vcmp.eq.f32.partialorder %v1404_v15, 8.507059e+37  ;;  %2275 = vpow2.f32 %v981_v31 }
 0x24b   :  { %v1388_v24 = vsel %vm1387_vm1, %v2268_v7, %v1384_v37  ;;  %v1396_v23 = vmul.f32 %v2270_v12, %v3742_v1  ;;  %1946 = vst [vmem:[#allocation2 + $0x58] sm:$0xff] %v1273_v41  ;;  %v977_v57 = vmul.f32 1.442695, %v896_v9  ;;  %v1374_v47 = vand.u32 2147483647, %v3750_v18 }
 0x24c   :  { %v2272_v36 = vpop.eup %2271  ;;  %v1393_v50 = vsel %vm3774_vm13, %v1392_v35, %v1388_v24  ;;  %v993_v19 = vmul.f32 1.442695, %v904_v29  ;;  %v860_v21 = vadd.f32 %v859_v34, %v3534_v2  ;;  %vm1401_vm3 = vweird.f32 %v2270_v12 }
 0x24d   :  { %1954 = vst [vmem:[#allocation2 + $0x98] sm:$0xff] %v1393_v50  ;;  %v1397_v42 = vsub.f32 1.0, %v1396_v23  ;;  %v1366_v39 = vmul.f32 %v2272_v36, %v3750_v18  ;;  %2277 = vpow2.f32 %v977_v57  ;;  %v778_v45 = vadd.f32 %v777_v17, %v3536_v49  ;;  %vm1402_vm5 = vmor %vm1400_vm15, %vm1401_vm3 }
 0x24e   :  { %v822_v52 = vadd.f32 %v821_v40, %v3523_v33  ;;  %v2274_v55 = vpop.eup %2273  ;;  %2279 = vpow2.f32 %v993_v19  ;;  %v905_v61 = vsub.f32 0.0, %v860_v21  ;;  %vm1371_vm4 = vweird.f32 %v2272_v36 }
 0x24f   :  { %v1398_v30 = vmul.f32 %v2270_v12, %v1397_v42  ;;  %v1367_v56 = vsub.f32 1.0, %v1366_v39  ;;  %v1376_v10 = vand.u32 2147483648, %v3750_v18  ;;  %v3805_v43 = vadd.f32 1.0, %v2274_v55 }
 0x250   :  { %v903_v48 = vsub.f32 0.0, %v778_v45  ;;  %v995_v5 = vmul.f32 1.442695, %v905_v61  ;;  %v863_v7 = vadd.f32 %v862_v53, %v3534_v2  ;;  %v2276_v60 = vpop.eup %2275  ;;  %v1407_v54 = vor.u32 1.1754944e-38, %v1406_v38  ;;  %v780_v59 = vpop.f32.mrf.mxu3 }
 0x251   :  { %v1399_v44 = vadd.f32 %v2270_v12, %v1398_v30  ;;  %v1368_v4 = vmul.f32 %v2272_v36, %v1367_v56  ;;  %vm1370_vm11 = vweird.f32 %v3750_v18  ;;  %2281 = vrcp.f32 %v3805_v43 }
 0x252   :  { %v911_v32 = vsub.f32 0.0, %v822_v52  ;;  %v3813_v13 = vadd.f32 1.0, %v2276_v60  ;;  %2283 = vpow2.f32 %v995_v5  ;;  %vm1372_vm6 = vmor %vm1370_vm11, %vm1371_vm4  ;;  %vm1375_vm7 = vcmp.eq.f32.partialorder %v1374_v47, 8.507059e+37  ;;  %v824_v60 = vpop.f32.mrf.mxu0 }
 0x253   :  { %v1403_v51 = vsel %vm1402_vm5, %v2270_v12, %v1399_v44  ;;  %v1369_v46 = vadd.f32 %v2272_v36, %v1368_v4  ;;  %v2278_v0 = vpop.eup %2277  ;;  %v1377_v1 = vor.u32 1.1754944e-38, %v1376_v10  ;;  %v991_v16 = vmul.f32 1.442695, %v903_v48 }
 0x254   :  { %v1408_v6 = vsel %vm3793_vm2, %v1407_v54, %v1403_v51  ;;  %v2280_v22 = vpop.eup %2279  ;;  %v1494_v34 = vand.u32 2147483647, %v3805_v43  ;;  %2285 = vrcp.f32 %v3813_v13  ;;  %v912_v26 = vsub.f32 0.0, %v863_v7 }
 0x255   :  { %1955 = vst.msk [vmem:[#allocation2 + $0xa0] sm:$0xff] %vm179_vm0, %v1408_v6  ;;  %v1373_v18 = vsel %vm1372_vm6, %v2272_v36, %v1369_v46  ;;  %v1496_v8 = vand.u32 2147483648, %v3805_v43  ;;  %v3822_v11 = vadd.f32 1.0, %v2278_v0  ;;  %v3824_v27 = vadd.f32 1.0, %v2280_v22  ;;  %v865_v46 = vpop.f32.mrf.mxu1 }
 0x256   :  { %v1378_v25 = vsel %vm1375_vm7, %v1377_v1, %v1373_v18  ;;  %2287 = vpow2.f32 %v991_v16  ;;  %v1007_v62 = vmul.f32 1.442695, %v911_v32  ;;  %v1509_v15 = vand.u32 2147483647, %v3813_v13 }
 0x257   :  { %1953 = vst [vmem:[#allocation2 + $0x90] sm:$0xff] %v1378_v25  ;;  %v2282_v63 = vpop.eup %2281  ;;  %v1511_v58 = vand.u32 2147483648, %v3813_v13  ;;  %2289 = vrcp.f32 %v3822_v11  ;;  %v3830_v14 = vadd.f32 %v780_v59, %v3536_v49  ;;  %vm1490_vm8 = vweird.f32 %v3805_v43 }
 0x258   :  { %v2284_v28 = vpop.eup %2283  ;;  %v1486_v35 = vmul.f32 %v2282_v63, %v3805_v43  ;;  %vm3834_vm9 = vcmp.eq.f32.partialorder %v1494_v34, 8.507059e+37  ;;  %2291 = vrcp.f32 %v3824_v27  ;;  %v1497_v31 = vor.u32 1.1754944e-38, %v1496_v8  ;;  %v783_v0 = vpop.f32.mrf.mxu3 }
 0x259   :  { %vm1505_vm10 = vweird.f32 %v3813_v13  ;;  %v1479_v9 = vand.u32 2147483647, %v3822_v11  ;;  %v1009_v12 = vmul.f32 1.442695, %v912_v26  ;;  %v1481_v29 = vand.u32 2147483648, %v3822_v11 }
 0x25a   :  { %v2286_v20 = vpop.eup %2285  ;;  %v1487_v38 = vsub.f32 1.0, %v1486_v35  ;;  %v3842_v41 = vadd.f32 1.0, %v2284_v28  ;;  %2293 = vpow2.f32 %v1007_v62  ;;  %vm3845_vm12 = vcmp.eq.f32.partialorder %v1509_v15, 8.507059e+37 }
 0x25b   :  { %v1501_v24 = vmul.f32 %v2286_v20, %v3813_v13  ;;  %v1512_v3 = vor.u32 1.1754944e-38, %v1511_v58  ;;  %v1599_v17 = vand.u32 2147483647, %v3824_v27  ;;  %vm1491_vm13 = vweird.f32 %v2282_v63 }
 0x25c   :  { %v2288_v40 = vpop.eup %2287  ;;  %v1488_v36 = vmul.f32 %v2282_v63, %v1487_v38  ;;  %vm1475_vm14 = vweird.f32 %v3822_v11  ;;  %2295 = vrcp.f32 %v3842_v41  ;;  %vm1595_vm1 = vweird.f32 %v3824_v27  ;;  %vm1492_vm3 = vmor %vm1490_vm8, %vm1491_vm13 }
 0x25d   :  { %v2290_v50 = vpop.eup %2289  ;;  %v1502_v57 = vsub.f32 1.0, %v1501_v24  ;;  %v1601_v19 = vand.u32 2147483648, %v3824_v27  ;;  %v3854_v42 = vadd.f32 1.0, %v2288_v40  ;;  %2297 = vpow2.f32 %v1009_v12 }
 0x25e   :  { %v2292_v39 = vpop.eup %2291  ;;  %v1489_v47 = vadd.f32 %v2282_v63, %v1488_v36  ;;  %vm1506_vm15 = vweird.f32 %v2286_v20  ;;  %v1471_v21 = vmul.f32 %v2290_v50, %v3822_v11  ;;  %vm3857_vm2 = vcmp.eq.f32.partialorder %v1479_v9, 8.507059e+37 }
 0x25f   :  { %v1482_v52 = vor.u32 1.1754944e-38, %v1481_v29  ;;  %v1503_v53 = vmul.f32 %v2286_v20, %v1502_v57  ;;  %v1591_v55 = vmul.f32 %v2292_v39, %v3824_v27  ;;  %vm3865_vm4 = vcmp.eq.f32.partialorder %v1599_v17, 8.507059e+37  ;;  %vm1507_vm5 = vmor %vm1505_vm10, %vm1506_vm15  ;;  %v827_v57 = vpop.f32.mrf.mxu0 }
 0x260   :  { %v1614_v56 = vand.u32 2147483647, %v3842_v41  ;;  %v2294_v61 = vpop.eup %2293  ;;  %v1493_v10 = vsel %vm1492_vm3, %v2282_v63, %v1489_v47  ;;  %v1472_v48 = vsub.f32 1.0, %v1471_v21  ;;  %v1616_v44 = vand.u32 2147483648, %v3842_v41  ;;  %v868_v21 = vpop.f32.mrf.mxu1 }
 0x261   :  { %2299 = vrcp.f32 %v3854_v42  ;;  %v1498_v43 = vsel %vm3834_vm9, %v1497_v31, %v1493_v10  ;;  %v1504_v4 = vadd.f32 %v2286_v20, %v1503_v53  ;;  %v1592_v5 = vsub.f32 1.0, %v1591_v55  ;;  %v786_v45 = vpop.f32.mrf.mxu3 }
 0x262   :  { %v1602_v7 = vor.u32 1.1754944e-38, %v1601_v19  ;;  %v2296_v54 = vpop.eup %2295  ;;  %1961 = vst [vmem:[#allocation2 + $0xd0] sm:$0xff] %v1498_v43  ;;  %v1473_v32 = vmul.f32 %v2290_v50, %v1472_v48  ;;  %vm1476_vm11 = vweird.f32 %v2290_v50  ;;  %vm1610_vm6 = vweird.f32 %v3842_v41 }
 0x263   :  { %v3878_v51 = vadd.f32 1.0, %v2294_v61  ;;  %v2298_v6 = vpop.eup %2297  ;;  %v1508_v1 = vsel %vm1507_vm5, %v2286_v20, %v1504_v4  ;;  %v1593_v16 = vmul.f32 %v2292_v39, %v1592_v5  ;;  %vm1596_vm7 = vweird.f32 %v2292_v39  ;;  %vm1477_vm9 = vmor %vm1475_vm14, %vm1476_vm11 }
 0x264   :  { %v1606_v22 = vmul.f32 %v2296_v54, %v3842_v41  ;;  %vm3881_vm8 = vcmp.eq.f32.partialorder %v1614_v56, 8.507059e+37  ;;  %v1513_v13 = vsel %vm3845_vm12, %v1512_v3, %v1508_v1  ;;  %v1474_v34 = vadd.f32 %v2290_v50, %v1473_v32  ;;  %vm1597_vm12 = vmor %vm1595_vm1, %vm1596_vm7 }
 0x265   :  { %v1617_v26 = vor.u32 1.1754944e-38, %v1616_v44  ;;  %v1584_v59 = vand.u32 2147483647, %v3854_v42  ;;  %1962 = vst.msk [vmem:[#allocation2 + $0xd8] sm:$0xff] %vm179_vm0, %v1513_v13  ;;  %v1594_v25 = vadd.f32 %v2292_v39, %v1593_v16  ;;  %vm1580_vm10 = vweird.f32 %v3854_v42 }
 0x266   :  { %v1607_v8 = vsub.f32 1.0, %v1606_v22  ;;  %v1586_v62 = vand.u32 2147483648, %v3854_v42  ;;  %2301 = vrcp.f32 %v3878_v51  ;;  %v1478_v15 = vsel %vm1477_vm9, %v2290_v50, %v1474_v34 }
 0x267   :  { %v2300_v63 = vpop.eup %2299  ;;  %vm1611_vm13 = vweird.f32 %v2296_v54  ;;  %v3898_v58 = vadd.f32 1.0, %v2298_v6  ;;  %v910_v11 = vsub.f32 0.0, %v3830_v14  ;;  %v1483_v28 = vsel %vm3857_vm2, %v1482_v52, %v1478_v15 }
 0x268   :  { %v1598_v35 = vsel %vm1597_vm12, %v2292_v39, %v1594_v25  ;;  %v1608_v37 = vmul.f32 %v2296_v54, %v1607_v8  ;;  %v1576_v31 = vmul.f32 %v2300_v63, %v3854_v42  ;;  %1960 = vst [vmem:[#allocation2 + $0xc8] sm:$0xff] %v1483_v28  ;;  %vm3906_vm14 = vcmp.eq.f32.partialorder %v1584_v59, 8.507059e+37  ;;  %vm1612_vm1 = vmor %vm1610_vm6, %vm1611_vm13 }
 0x269   :  { %v1603_v9 = vsel %vm3865_vm4, %v1602_v7, %v1598_v35  ;;  %v1704_v27 = vand.u32 2147483647, %v3878_v51  ;;  %v1706_v20 = vand.u32 2147483648, %v3878_v51  ;;  %v1587_v29 = vor.u32 1.1754944e-38, %v1586_v62 }
 0x26a   :  { %1968 = vst [vmem:[#allocation2 + $0x108] sm:$0xff] %v1603_v9  ;;  %v1609_v14 = vadd.f32 %v2296_v54, %v1608_v37  ;;  %v1577_v38 = vsub.f32 1.0, %v1576_v31  ;;  %2303 = vrcp.f32 %v3898_v58  ;;  %vm1581_vm15 = vweird.f32 %v2300_v63 }
 0x26b   :  { %vm1700_vm2 = vweird.f32 %v3878_v51  ;;  %v1005_v24 = vmul.f32 1.442695, %v910_v11  ;;  %v825_v23 = vadd.f32 %v824_v60, %v3523_v33  ;;  %v866_v36 = vadd.f32 %v865_v46, %v3534_v2  ;;  %vm1582_vm4 = vmor %vm1580_vm10, %vm1581_vm15 }
 0x26c   :  { %v2302_v3 = vpop.eup %2301  ;;  %v1613_v17 = vsel %vm1612_vm1, %v2296_v54, %v1609_v14  ;;  %v1578_v40 = vmul.f32 %v2300_v63, %v1577_v38  ;;  %v784_v50 = vadd.f32 %v783_v0, %v3536_v49  ;;  %vm3923_vm3 = vcmp.eq.f32.partialorder %v1704_v27, 8.507059e+37 }
 0x26d   :  { %v1618_v19 = vsel %vm3881_vm8, %v1617_v26, %v1613_v17  ;;  %v1696_v41 = vmul.f32 %v2302_v3, %v3878_v51  ;;  %v1707_v47 = vor.u32 1.1754944e-38, %v1706_v20  ;;  %v1719_v53 = vand.u32 2147483647, %v3898_v58 }
 0x26e   :  { %1969 = vst.msk [vmem:[#allocation2 + $0x110] sm:$0xff] %vm179_vm0, %v1618_v19  ;;  %v1579_v52 = vadd.f32 %v2300_v63, %v1578_v40  ;;  %2305 = vpow2.f32 %v1005_v24  ;;  %v918_v55 = vsub.f32 0.0, %v825_v23  ;;  %v919_v56 = vsub.f32 0.0, %v866_v36 }
 0x26f   :  { %v1697_v30 = vsub.f32 1.0, %v1696_v41  ;;  %v917_v61 = vsub.f32 0.0, %v784_v50  ;;  %v828_v10 = vadd.f32 %v827_v57, %v3523_v33  ;;  %v869_v4 = vadd.f32 %v868_v21, %v3534_v2 }
 0x270   :  { %v2304_v48 = vpop.eup %2303  ;;  %v1583_v44 = vsel %vm1582_vm4, %v2300_v63, %v1579_v52  ;;  %v1021_v43 = vmul.f32 1.442695, %v918_v55  ;;  %v787_v5 = vadd.f32 %v786_v45, %v3536_v49  ;;  %vm1701_vm5 = vweird.f32 %v2302_v3 }
 0x271   :  { %v1588_v7 = vsel %vm3906_vm14, %v1587_v29, %v1583_v44  ;;  %v1698_v60 = vmul.f32 %v2302_v3, %v1697_v30  ;;  %v1711_v42 = vmul.f32 %v2304_v48, %v3898_v58  ;;  %v1023_v54 = vmul.f32 1.442695, %v919_v56  ;;  %vm1702_vm11 = vmor %vm1700_vm2, %vm1701_vm5 }
 0x272   :  { %1967 = vst [vmem:[#allocation2 + $0x100] sm:$0xff] %v1588_v7  ;;  %2307 = vpow2.f32 %v1021_v43  ;;  %v1019_v32 = vmul.f32 1.442695, %v917_v61  ;;  %v925_v46 = vsub.f32 0.0, %v828_v10  ;;  %v1721_v6 = vand.u32 2147483648, %v3898_v58 }
 0x273   :  { %v1699_v33 = vadd.f32 %v2302_v3, %v1698_v60  ;;  %v1712_v0 = vsub.f32 1.0, %v1711_v42  ;;  %v926_v1 = vsub.f32 0.0, %v869_v4  ;;  %vm1716_vm6 = vweird.f32 %v2304_v48 }
 0x274   :  { %v2306_v2 = vpop.eup %2305  ;;  %2309 = vpow2.f32 %v1023_v54  ;;  %v1035_v49 = vmul.f32 1.442695, %v925_v46  ;;  %v924_v16 = vsub.f32 0.0, %v787_v5  ;;  %vm1715_vm7 = vweird.f32 %v3898_v58 }
 0x275   :  { %v1703_v22 = vsel %vm1702_vm11, %v2302_v3, %v1699_v33  ;;  %v1713_v18 = vmul.f32 %v2304_v48, %v1712_v0  ;;  %v1078_v13 = vadd.f32 1.0, %v2306_v2  ;;  %2311 = vpow2.f32 %v1019_v32  ;;  %vm1717_vm8 = vmor %vm1715_vm7, %vm1716_vm6 }
 0x276   :  { %v1708_v34 = vsel %vm3923_vm3, %v1707_v47, %v1703_v22  ;;  %2313 = vpow2.f32 %v1035_v49  ;;  %v1037_v26 = vmul.f32 1.442695, %v926_v1  ;;  %v1722_v25 = vor.u32 1.1754944e-38, %v1721_v6 }
 0x277   :  { %1975 = vst [vmem:[#allocation2 + $0x140] sm:$0xff] %v1708_v34  ;;  %v1714_v59 = vadd.f32 %v2304_v48, %v1713_v18  ;;  %2315 = vrcp.f32 %v1078_v13  ;;  %v1033_v8 = vmul.f32 1.442695, %v924_v16  ;;  %vm1720_vm9 = vcmp.eq.f32.partialorder %v1719_v53, 8.507059e+37 }
 0x278   :  { %v2308_v51 = vpop.eup %2307  ;;  %2317 = vpow2.f32 %v1037_v26  ;;  %v1689_v9 = vand.u32 2147483647, %v1078_v13  ;;  %v1691_v12 = vand.u32 2147483648, %v1078_v13  ;;  %vm1685_vm10 = vweird.f32 %v1078_v13 }
 0x279   :  { %v1718_v62 = vsel %vm1717_vm8, %v2304_v48, %v1714_v59  ;;  %v3945_v63 = vadd.f32 1.0, %v2308_v51 }
 0x27a   :  { %v2310_v15 = vpop.eup %2309  ;;  %v1723_v11 = vsel %vm1720_vm9, %v1722_v25, %v1718_v62  ;;  %vm3960_vm12 = vcmp.eq.f32.partialorder %v1689_v9, 8.507059e+37  ;;  %v1692_v17 = vor.u32 1.1754944e-38, %v1691_v12 }
 0x27b   :  { %v2312_v28 = vpop.eup %2311  ;;  %1976 = vst.msk [vmem:[#allocation2 + $0x148] sm:$0xff] %vm179_vm0, %v1723_v11  ;;  %2319 = vrcp.f32 %v3945_v63  ;;  %v3949_v58 = vadd.f32 1.0, %v2310_v15  ;;  %v1809_v14 = vand.u32 2147483647, %v3945_v63  ;;  %v1811_v38 = vand.u32 2147483648, %v3945_v63 }
 0x27c   :  { %v2314_v35 = vpop.eup %2313  ;;  %v3951_v37 = vadd.f32 1.0, %v2312_v28  ;;  %2321 = vpow2.f32 %v1033_v8  ;;  %vm1805_vm13 = vweird.f32 %v3945_v63 }
 0x27d   :  { %v2316_v31 = vpop.eup %2315  ;;  %v3953_v27 = vadd.f32 1.0, %v2314_v35  ;;  %2323 = vrcp.f32 %v3949_v58  ;;  %vm3966_vm1 = vcmp.eq.f32.partialorder %v1809_v14, 8.507059e+37  ;;  %v1812_v19 = vor.u32 1.1754944e-38, %v1811_v38 }
 0x27e   :  { %v1681_v20 = vmul.f32 %v2316_v31, %v1078_v13  ;;  %2325 = vrcp.f32 %v3951_v37  ;;  %v2318_v29 = vpop.eup %2317  ;;  %vm1686_vm14 = vweird.f32 %v2316_v31  ;;  %vm1820_vm15 = vweird.f32 %v3949_v58 }
 0x27f   :  { %2327 = vrcp.f32 %v3953_v27  ;;  %v1824_v41 = vand.u32 2147483647, %v3949_v58  ;;  %v1826_v39 = vand.u32 2147483648, %v3949_v58  ;;  %v3973_v47 = vadd.f32 1.0, %v2318_v29  ;;  %vm1687_vm3 = vmor %vm1685_vm10, %vm1686_vm14 }
 0x280   :  { %v1682_v24 = vsub.f32 1.0, %v1681_v20  ;;  %vm1790_vm2 = vweird.f32 %v3951_v37  ;;  %v1794_v53 = vand.u32 2147483647, %v3951_v37  ;;  %v1796_v56 = vand.u32 2147483648, %v3951_v37 }
 0x281   :  { %v2320_v23 = vpop.eup %2319  ;;  %2329 = vrcp.f32 %v3973_v47  ;;  %vm3986_vm5 = vcmp.eq.f32.partialorder %v1824_v41, 8.507059e+37  ;;  %v1827_v54 = vor.u32 1.1754944e-38, %v1826_v39  ;;  %v1914_v46 = vand.u32 2147483647, %v3953_v27 }
 0x282   :  { %v2322_v40 = vpop.eup %2321  ;;  %v1683_v36 = vmul.f32 %v2316_v31, %v1682_v24  ;;  %v1801_v50 = vmul.f32 %v2320_v23, %v3945_v63  ;;  %vm1806_vm4 = vweird.f32 %v2320_v23  ;;  %v1916_v2 = vand.u32 2147483648, %v3953_v27 }
 0x283   :  { %v2324_v21 = vpop.eup %2323  ;;  %v3981_v61 = vadd.f32 1.0, %v2322_v40  ;;  %vm1807_vm11 = vmor %vm1805_vm13, %vm1806_vm4  ;;  %vm1795_vm10 = vcmp.eq.f32.partialorder %v1794_v53, 8.507059e+37  ;;  %v1797_v59 = vor.u32 1.1754944e-38, %v1796_v56  ;;  %vm1915_vm14 = vcmp.eq.f32.partialorder %v1914_v46, 8.507059e+37 }
 0x284   :  { %v1684_v45 = vadd.f32 %v2316_v31, %v1683_v36  ;;  %v1802_v52 = vsub.f32 1.0, %v1801_v50  ;;  %v2326_v55 = vpop.eup %2325  ;;  %v1816_v30 = vmul.f32 %v2324_v21, %v3949_v58  ;;  %vm1821_vm6 = vweird.f32 %v2324_v21 }
 0x285   :  { %v2328_v10 = vpop.eup %2327  ;;  %v1786_v43 = vmul.f32 %v2326_v55, %v3951_v37  ;;  %2331 = vrcp.f32 %v3981_v61  ;;  %vm1791_vm7 = vweird.f32 %v2326_v55  ;;  %vm1822_vm9 = vmor %vm1820_vm15, %vm1821_vm6  ;;  %v1917_v62 = vor.u32 1.1754944e-38, %v1916_v2 }
 0x286   :  { %v1688_v48 = vsel %vm1687_vm3, %v2316_v31, %v1684_v45  ;;  %v1803_v44 = vmul.f32 %v2320_v23, %v1802_v52  ;;  %v1817_v5 = vsub.f32 1.0, %v1816_v30  ;;  %v1906_v60 = vmul.f32 %v2328_v10, %v3953_v27  ;;  %vm1792_vm13 = vmor %vm1790_vm2, %vm1791_vm7 }
 0x287   :  { %v1693_v4 = vsel %vm3960_vm12, %v1692_v17, %v1688_v48  ;;  %v1787_v32 = vsub.f32 1.0, %v1786_v43  ;;  %v2330_v49 = vpop.eup %2329  ;;  %vm1911_vm8 = vweird.f32 %v2328_v10  ;;  %vm1910_vm12 = vweird.f32 %v3953_v27 }
 0x288   :  { %1974 = vst [vmem:[#allocation2 + $0x138] sm:$0xff] %v1693_v4  ;;  %v1804_v42 = vadd.f32 %v2320_v23, %v1803_v44  ;;  %v1818_v33 = vmul.f32 %v2324_v21, %v1817_v5  ;;  %v1907_v0 = vsub.f32 1.0, %v1906_v60  ;;  %v1921_v34 = vmul.f32 %v2330_v49, %v3973_v47 }
 0x289   :  { %v1788_v1 = vmul.f32 %v2326_v55, %v1787_v32  ;;  %v1929_v35 = vand.u32 2147483647, %v3973_v47  ;;  %v1931_v58 = vand.u32 2147483648, %v3973_v47  ;;  %vm1926_vm15 = vweird.f32 %v2330_v49 }
 0x28a   :  { %v1808_v6 = vsel %vm1807_vm11, %v2320_v23, %v1804_v42  ;;  %v1819_v22 = vadd.f32 %v2324_v21, %v1818_v33  ;;  %v1908_v18 = vmul.f32 %v2328_v10, %v1907_v0  ;;  %v1922_v63 = vsub.f32 1.0, %v1921_v34 }
 0x28b   :  { %v1813_v16 = vsel %vm3966_vm1, %v1812_v19, %v1808_v6  ;;  %v1789_v13 = vadd.f32 %v2326_v55, %v1788_v1  ;;  %vm1912_vm1 = vmor %vm1910_vm12, %vm1911_vm8  ;;  %v2332_v15 = vpop.eup %2331  ;;  %vm1925_vm2 = vweird.f32 %v3973_v47  ;;  %vm1930_vm4 = vcmp.eq.f32.partialorder %v1929_v35, 8.507059e+37 }
 0x28c   :  { %1982 = vst [vmem:[#allocation2 + $0x178] sm:$0xff] %v1813_v16  ;;  %v1823_v26 = vsel %vm1822_vm9, %v2324_v21, %v1819_v22  ;;  %v1909_v51 = vadd.f32 %v2328_v10, %v1908_v18  ;;  %v1923_v31 = vmul.f32 %v2330_v49, %v1922_v63  ;;  %v1891_v9 = vmul.f32 %v2332_v15, %v3981_v61  ;;  %vm1927_vm3 = vmor %vm1925_vm2, %vm1926_vm15 }
 0x28d   :  { %v1828_v25 = vsel %vm3986_vm5, %v1827_v54, %v1823_v26  ;;  %v1793_v8 = vsel %vm1792_vm13, %v2326_v55, %v1789_v13  ;;  %v1932_v20 = vor.u32 1.1754944e-38, %v1931_v58  ;;  %v1901_v14 = vand.u32 2147483648, %v3981_v61 }
 0x28e   :  { %1983 = vst.msk [vmem:[#allocation2 + $0x180] sm:$0xff] %vm179_vm0, %v1828_v25  ;;  %v1798_v11 = vsel %vm1795_vm10, %v1797_v59, %v1793_v8  ;;  %v1913_v28 = vsel %vm1912_vm1, %v2328_v10, %v1909_v51  ;;  %v1924_v12 = vadd.f32 %v2330_v49, %v1923_v31  ;;  %v1892_v27 = vsub.f32 1.0, %v1891_v9 }
 0x28f   :  { %1981 = vst [vmem:[#allocation2 + $0x170] sm:$0xff] %v1798_v11  ;;  %v1918_v37 = vsel %vm1915_vm14, %v1917_v62, %v1913_v28  ;;  %vm1896_vm5 = vweird.f32 %v2332_v15  ;;  %v1899_v24 = vand.u32 2147483647, %v3981_v61  ;;  %vm1895_vm11 = vweird.f32 %v3981_v61 }
 0x290   :  { %1989 = vst [vmem:[#allocation2 + $0x1b0] sm:$0xff] %v1918_v37  ;;  %v1928_v38 = vsel %vm1927_vm3, %v2330_v49, %v1924_v12  ;;  %v1893_v29 = vmul.f32 %v2332_v15, %v1892_v27  ;;  %vm1897_vm6 = vmor %vm1895_vm11, %vm1896_vm5  ;;  %v1902_v17 = vor.u32 1.1754944e-38, %v1901_v14 }
 0x291   :  { %v1933_v23 = vsel %vm1930_vm4, %v1932_v20, %v1928_v38  ;;  %vm1900_vm7 = vcmp.eq.f32.partialorder %v1899_v24, 8.507059e+37 }
 0x292   :  { %1990 = vst.msk [vmem:[#allocation2 + $0x1b8] sm:$0xff] %vm179_vm0, %v1933_v23  ;;  %v1894_v3 = vadd.f32 %v2332_v15, %v1893_v29 }
 0x294   :  { %v1898_v40 = vsel %vm1897_vm6, %v2332_v15, %v1894_v3 }
 0x295   :  { %v1903_v36 = vsel %vm1900_vm7, %v1902_v17, %v1898_v40 }
 0x296   :  { %1988 = vst [vmem:[#allocation2 + $0x1a8] sm:$0xff] %v1903_v36 }
 0x297   :  { %2003 = dma.vmem_to_hbm [thread:$0]  %s1996_s29, 7168, %s1998_s7, [#allocation3], %s2361_s8, %s2361_s8, %s2362_s9  }
 0x298   :  { %2358 = dma.done.wait [#allocation3], 7168  }
 0x299   :  { %2359 = vsyncadd [#allocation3], 4294960128 }
 0x29a   :  { %2008 = vsyncpa [#allocation3], 1 }

</bundles_post_ra>
